<compile_context>
chip_gen: v6e
topology: v6e:2x2x1
jax: 0.10.0
libtpu: 0.0.40
codegen_flags: <defaults>
</compile_context>

<pallas_src>
import functools

import jax
import jax.numpy as jnp
import numpy as np
from jax.experimental import pallas as pl
from jax.experimental.pallas import tpu as pltpu

NEG_INF = -1e9


# ----------------------------------------------------------------------------
# In-kernel helpers
# ----------------------------------------------------------------------------
def _add_ln(x, r, g, b, eps):
    """LayerNorm(x + r) over the last dim (PyTorch semantics), f32."""
    y = x + r
    mean = jnp.mean(y, axis=-1, keepdims=True)
    var = jnp.mean((y - mean) ** 2, axis=-1, keepdims=True)
    return (y - mean) * jax.lax.rsqrt(var + eps) * g + b


# ----------------------------------------------------------------------------
# Fused whole-model kernel
# ----------------------------------------------------------------------------
def _decoder_kernel(ids_ref, pos_ref, enc_ref, sbias_ref, cbias_ref, emb_ref,
                    vecs_ref, w_sa_ref, wq_l_ref, wkvo_l_ref, w1_l_ref,
                    w2_l_ref, cls_ref, out_ref, *,
                    num_heads, num_layers, num_classes, eps_top, eps_layer):
    n_rows, D = pos_ref.shape
    hd = D // num_heads
    bf = jnp.bfloat16

    vecs = vecs_ref[...]                            # (P, D) f32

    def vec(i):                                     # static row -> (1, D)
        return vecs[i:i + 1, :]

    # ---- phrase embedding: one-hot(ids) @ emb + positional ----
    ids = ids_ref[...]                              # (B*L, 1) int32
    iota = jax.lax.broadcasted_iota(jnp.int32, (n_rows, num_classes), 1)
    onehot = (iota == ids).astype(bf)
    x = jnp.dot(onehot, emb_ref[...],
                preferred_element_type=jnp.float32) + pos_ref[...]

    sbias = sbias_ref[...]                          # (B*L, B*L)
    cbias = cbias_ref[...]                          # (B*L, B*S)
    enc_bf = enc_ref[...]                           # (B*S, D) bf16

    def attn_core(q, k, vfold, bias, bo):
        """q:(Nq,D), k:(Nk,D), vfold:(Nk,H*D) f32; bias:(Nq,Nk); bo:(1,D)."""
        q_bf = q.astype(bf)
        k_bf = k.astype(bf)
        v_bf = vfold.astype(bf)
        acc = jnp.zeros((q.shape[0], D), jnp.float32)
        for h in range(num_heads):                  # static unroll, tiny H
            lo = h * hd
            s = jax.lax.dot_general(                # NT matmul, no transpose
                q_bf[:, lo:lo + hd], k_bf[:, lo:lo + hd],
                (((1,), (1,)), ((), ())),
                preferred_element_type=jnp.float32)
            s = s + bias                            # scale pre-folded into Wq
            s = s - jnp.max(s, axis=-1, keepdims=True)
            e = jnp.exp(s)
            p = e * pl.reciprocal(jnp.sum(e, axis=-1, keepdims=True),
                                  approx=True)      # EUP divide
            acc = acc + jnp.dot(p.astype(bf), v_bf[:, h * D:(h + 1) * D],
                                preferred_element_type=jnp.float32)
        return acc + bo                             # bv@Wo folded into bo

    # ---- top-level self attention + LayerNorm (eps = 1e-5) ----
    proj = jnp.dot(x.astype(bf), w_sa_ref[...],     # (Nq, 2D + H*D)
                   preferred_element_type=jnp.float32)
    q = proj[:, :D] + vec(0)
    k = proj[:, D:2 * D] + vec(1)
    attn = attn_core(q, k, proj[:, 2 * D:], sbias, vec(2))
    x = _add_ln(x, attn, vec(3), vec(4), eps_top)

    # ---- decoder layers: cross-attn into enc_out + FFN (eps = 1e-6) ----
    for l in range(num_layers):                     # static unroll
        r = 5 + l * 7
        q = jnp.dot(x.astype(bf), wq_l_ref[l],
                    preferred_element_type=jnp.float32) + vec(r)
        kv = jnp.dot(enc_bf, wkvo_l_ref[l],         # (Nk, D + H*D)
                     preferred_element_type=jnp.float32)
        k = kv[:, :D] + vec(r + 1)
        attn = attn_core(q, k, kv[:, D:], cbias, vec(r + 2))
        x = _add_ln(x, attn, vec(r + 3), vec(r + 4), eps_layer)

        h = jnp.dot(x.astype(bf), w1_l_ref[l],
                    preferred_element_type=jnp.float32)
        h = 0.5 * h * (1.0 + jax.lax.erf(h * np.float32(1.0 / np.sqrt(2.0))))
        f = jnp.dot(h.astype(bf), w2_l_ref[l],
                    preferred_element_type=jnp.float32)
        x = _add_ln(x, f, vec(r + 5), vec(r + 6), eps_layer)

    # ---- classifier (weight pre-padded to a lane-dense 128-wide output) ----
    out_ref[...] = jnp.dot(x.astype(bf), cls_ref[...],
                           preferred_element_type=jnp.float32)


# ----------------------------------------------------------------------------
# Host-side: one-time parameter folding / packing
# ----------------------------------------------------------------------------
def pack_params(params, num_head):
    """Fold per-head V*O, scale, biases and pack everything into a few slabs."""
    C, D = params["emb"].shape
    hd = D // num_head
    scale = np.float32(1.0 / np.sqrt(hd))
    bf = jnp.bfloat16

    def fold(ap):
        wq = ap["wq"] * scale                       # fold 1/sqrt(hd) into Wq
        bq = ap["bq"] * scale
        wvo = jnp.concatenate(                      # (D, H*D)
            [ap["wv"][:, h * hd:(h + 1) * hd] @ ap["wo"][h * hd:(h + 1) * hd, :]
             for h in range(num_head)], axis=1)
        bo_eff = ap["bo"] + ap["bv"] @ ap["wo"]     # fold bv@Wo into bo
        return wq, bq, ap["wk"], ap["bk"], wvo, bo_eff

    wq, bq, wk, bk, wvo, bo = fold(params["self_attn"])
    w_sa = jnp.concatenate([wq, wk, wvo], axis=1)   # (D, 2D + H*D)
    vec_rows = [bq, bk, bo, params["ln_g"], params["ln_b"]]

    wq_layers, wkvo_layers, w1_layers, w2_layers = [], [], [], []
    for lp in params["layers"]:
        wq, bq, wk, bk, wvo, bo = fold(lp["attn"])
        wq_layers.append(wq)
        wkvo_layers.append(jnp.concatenate([wk, wvo], axis=1))
        w1_layers.append(lp["w1"])
        w2_layers.append(lp["w2"])
        vec_rows += [bq, bk, bo, lp["ln1_g"], lp["ln1_b"],
                     lp["ln2_g"], lp["ln2_b"]]

    Cpad = ((C + 127) // 128) * 128                 # lane-dense output width
    cls_pad = jnp.zeros((D, Cpad), jnp.float32).at[:, :C].set(params["cls"])

    return {
        "emb": params["emb"].astype(bf),
        "pos": params["pos"],                       # f32 (added elementwise)
        "vecs": jnp.concatenate(vec_rows, axis=0).astype(jnp.float32),
        "w_sa": w_sa.astype(bf),
        "wq_layers": jnp.stack(wq_layers).astype(bf),      # (NL, D, D)
        "wkvo_layers": jnp.stack(wkvo_layers).astype(bf),  # (NL, D, D+H*D)
        "w1_layers": jnp.stack(w1_layers).astype(bf),      # (NL, D, F)
        "w2_layers": jnp.stack(w2_layers).astype(bf),      # (NL, F, D)
        "cls_pad": cls_pad.astype(bf),                     # (D, Cpad)
    }


def _block_bias(key_mask, q_per_batch):
    """Additive bias (B*Lq, B*Lk): 0 for same-batch kept keys, -1e9 otherwise."""
    B, Lk = key_mask.shape
    row_b = jnp.repeat(jnp.arange(B, dtype=jnp.int32), q_per_batch)
    col_b = jnp.repeat(jnp.arange(B, dtype=jnp.int32), Lk)
    keep = (row_b[:, None] == col_b[None, :]) & \
           (key_mask.reshape(1, B * Lk) > 0.5)
    return jnp.where(keep, 0.0, NEG_INF).astype(jnp.float32)


# ----------------------------------------------------------------------------
# Forward pass: single fused pallas_call (jitted)
# ----------------------------------------------------------------------------
@functools.partial(jax.jit, static_argnames=("num_head", "max_phrase_length"))
def decoder_forward(packed, phrase_ids, enc_out, phrase_mask, seq_mask, *,
                    num_head, max_phrase_length):
    B, L = phrase_ids.shape
    S = enc_out.shape[1]
    C, D = packed["emb"].shape
    NL = packed["wq_layers"].shape[0]
    F = packed["w1_layers"].shape[2]
    Cpad = packed["cls_pad"].shape[1]
    HD = num_head * D
    n_rows = B * L

    ids2 = phrase_ids.reshape(n_rows, 1).astype(jnp.int32)
    pos2 = jnp.broadcast_to(packed["pos"][:L][None], (B, L, D)).reshape(n_rows, D)
    enc2 = enc_out.astype(jnp.bfloat16).reshape(B * S, D)
    sbias = _block_bias(phrase_mask.astype(jnp.float32), L)
    cbias = _block_bias(seq_mask.astype(jnp.float32), L)

    all_inputs = [ids2, pos2, enc2, sbias, cbias,
                  packed["emb"], packed["vecs"], packed["w_sa"],
                  packed["wq_layers"], packed["wkvo_layers"],
                  packed["w1_layers"], packed["w2_layers"], packed["cls_pad"]]

    kernel = functools.partial(
        _decoder_kernel, num_heads=num_head, num_layers=NL, num_classes=C,
        eps_top=1e-5, eps_layer=1e-6)

    # Advisory cost estimate (self-attn uses B*L keys; cross uses B*S).
    nk_s, nk_c = B * L, B * S
    flops_sa = (2 * n_rows * D * (2 * D + HD)
                + 2 * n_rows * nk_s * D + 2 * num_head * n_rows * nk_s * D)
    flops_ca = (2 * n_rows * D * D + 2 * nk_c * D * (D + HD)
                + 2 * n_rows * nk_c * D + 2 * num_head * n_rows * nk_c * D)
    flops_ffn = 4 * n_rows * D * F
    flops = (2 * n_rows * C * D + flops_sa + NL * (flops_ca + flops_ffn)
             + 2 * n_rows * D * Cpad)
    transcendentals = num_head * n_rows * (nk_s + NL * nk_c) + NL * n_rows * F
    in_bytes = sum(int(np.prod(a.shape)) * a.dtype.itemsize for a in all_inputs)
    out_bytes = n_rows * Cpad * 4

    vmem_spec = pl.BlockSpec(memory_space=pltpu.MemorySpace.VMEM)
    out = pl.pallas_call(
        kernel,
        out_shape=jax.ShapeDtypeStruct((n_rows, Cpad), jnp.float32),
        in_specs=[vmem_spec] * len(all_inputs),
        out_specs=vmem_spec,
        compiler_params=pltpu.CompilerParams(vmem_limit_bytes=32 * 1024 * 1024),
        cost_estimate=pl.CostEstimate(
            flops=int(flops),
            transcendentals=int(transcendentals),
            bytes_accessed=int(in_bytes + out_bytes)),
    )(*all_inputs)

    return out.reshape(B, L, Cpad)[:, : max_phrase_length - 1, :C]


# ----------------------------------------------------------------------------
# Parameter init (deterministic, synthetic — mirrors the PyTorch module shapes)
# ----------------------------------------------------------------------------
def _attn_params(key, D):
    ks = jax.random.split(key, 8)
    s = 0.05
    return {
        "wq": jax.random.normal(ks[0], (D, D), jnp.float32) * s,
        "bq": jax.random.normal(ks[1], (1, D), jnp.float32) * s,
        "wk": jax.random.normal(ks[2], (D, D), jnp.float32) * s,
        "bk": jax.random.normal(ks[3], (1, D), jnp.float32) * s,
        "wv": jax.random.normal(ks[4], (D, D), jnp.float32) * s,
        "bv": jax.random.normal(ks[5], (1, D), jnp.float32) * s,
        "wo": jax.random.normal(ks[6], (D, D), jnp.float32) * s,
        "bo": jax.random.normal(ks[7], (1, D), jnp.float32) * s,
    }


def init_params(key, num_hid, num_ff, num_layers, num_classes):
    D, F, C = num_hid, num_ff, num_classes
    keys = jax.random.split(key, 5 + num_layers)
    params = {
        "emb": jax.random.normal(keys[0], (C, D), jnp.float32) * 0.05,
        "pos": jax.random.normal(keys[1], (128, D), jnp.float32) * 0.05,
        "self_attn": _attn_params(keys[2], D),
        "ln_g": jnp.ones((1, D), jnp.float32),
        "ln_b": jnp.zeros((1, D), jnp.float32),
        "cls": jax.random.normal(keys[3], (D, C), jnp.float32) * 0.05,
        "layers": [],
    }
    for i in range(num_layers):
        lk = jax.random.split(keys[5 + i], 3)
        params["layers"].append({
            "attn": _attn_params(lk[0], D),
            "ln1_g": jnp.ones((1, D), jnp.float32),
            "ln1_b": jnp.zeros((1, D), jnp.float32),
            "ln2_g": jnp.ones((1, D), jnp.float32),
            "ln2_b": jnp.zeros((1, D), jnp.float32),
            "w1": jax.random.normal(lk[1], (D, F), jnp.float32) * 0.05,
            "w2": jax.random.normal(lk[2], (F, D), jnp.float32) * 0.05,
        })
    return params


# ----------------------------------------------------------------------------
if __name__ == "__main__":
    B = 2                 # batch
    L = 8                 # max_phrase_length
    S = 16                # encoder sequence length
    D = 32                # num_hid
    H = 4                 # num_head
    F = 64                # num_feed_forward
    NL = 2                # num_layers
    C = 64                # num_classes

    root = jax.random.PRNGKey(0)
    k_par, k_ids, k_enc = jax.random.split(root, 3)

    params = init_params(k_par, num_hid=D, num_ff=F, num_layers=NL,
                         num_classes=C)
    packed = pack_params(params, num_head=H)        # one-time folding/packing

    phrase_ids = jax.random.randint(k_ids, (B, L), 0, C, dtype=jnp.int32)
    enc_out = jax.random.normal(k_enc, (B, S, D), jnp.float32)
    phrase_mask = jnp.ones((B, L), jnp.float32)
    seq_mask = jnp.ones((B, S), jnp.float32).at[:, S - 2:].set(0.0)

    out = decoder_forward(packed, phrase_ids, enc_out, phrase_mask, seq_mask,
                          num_head=H, max_phrase_length=L)
    out = jax.block_until_ready(out)

    assert out.shape == (B, L - 1, C), out.shape
    assert jnp.all(jnp.isfinite(out))
    print("KERNEL_OK")
</pallas_src>

<mosaic_0001>
module attributes {stable_mosaic.version = 11 : i64} {
  func.func @_decoder_kernel(%arg0: memref<16x1xi32, #tpu.memory_space<vmem>>, %arg1: memref<16x32xf32, #tpu.memory_space<vmem>>, %arg2: memref<32x32xbf16, #tpu.memory_space<vmem>>, %arg3: memref<16x16xf32, #tpu.memory_space<vmem>>, %arg4: memref<16x32xf32, #tpu.memory_space<vmem>>, %arg5: memref<64x32xbf16, #tpu.memory_space<vmem>>, %arg6: memref<19x32xf32, #tpu.memory_space<vmem>>, %arg7: memref<32x192xbf16, #tpu.memory_space<vmem>>, %arg8: memref<2x32x32xbf16, #tpu.memory_space<vmem>>, %arg9: memref<2x32x160xbf16, #tpu.memory_space<vmem>>, %arg10: memref<2x32x64xbf16, #tpu.memory_space<vmem>>, %arg11: memref<2x64x32xbf16, #tpu.memory_space<vmem>>, %arg12: memref<32x128xbf16, #tpu.memory_space<vmem>>, %arg13: memref<16x128xf32, #tpu.memory_space<vmem>>) attributes {dimension_semantics = [], scalar_prefetch = 0 : i64, scratch_operands = 0 : i64, tpu.core_type = #tpu.core_type<tc>} {
    %c0 = arith.constant 0 : index
    %c0_0 = arith.constant 0 : index
    %0 = vector.load %arg6[%c0, %c0_0] : memref<19x32xf32, #tpu.memory_space<vmem>>, vector<19x32xf32>
    %c0_1 = arith.constant 0 : index
    %c0_2 = arith.constant 0 : index
    %1 = vector.load %arg0[%c0_1, %c0_2] : memref<16x1xi32, #tpu.memory_space<vmem>>, vector<16x1xi32>
    %2 = tpu.iota {dimensions = array<i32: 1>} : vector<16x64xi32>
    %3 = vector.broadcast %1 : vector<16x1xi32> to vector<16x64xi32>
    %4 = arith.cmpi eq, %2, %3 : vector<16x64xi32>
    %5 = arith.extui %4 : vector<16x64xi1> to vector<16x64xi32>
    %6 = arith.sitofp %5 : vector<16x64xi32> to vector<16x64xf32>
    %7 = arith.truncf %6 : vector<16x64xf32> to vector<16x64xbf16>
    %c0_3 = arith.constant 0 : index
    %c0_4 = arith.constant 0 : index
    %8 = vector.load %arg5[%c0_3, %c0_4] : memref<64x32xbf16, #tpu.memory_space<vmem>>, vector<64x32xbf16>
    %cst = arith.constant dense<0.000000e+00> : vector<16x32xf32>
    %9 = tpu.matmul %7, %8, %cst {dimension_numbers = #tpu.dot_dimension_numbers<[1], [0], [0], [1], [0, 0, 1, 1], [], []>} : vector<16x64xbf16>, vector<64x32xbf16>, vector<16x32xf32> -> vector<16x32xf32>
    %c0_5 = arith.constant 0 : index
    %c0_6 = arith.constant 0 : index
    %10 = vector.load %arg1[%c0_5, %c0_6] : memref<16x32xf32, #tpu.memory_space<vmem>>, vector<16x32xf32>
    %11 = arith.addf %9, %10 : vector<16x32xf32>
    %c0_7 = arith.constant 0 : index
    %c0_8 = arith.constant 0 : index
    %12 = vector.load %arg3[%c0_7, %c0_8] : memref<16x16xf32, #tpu.memory_space<vmem>>, vector<16x16xf32>
    %c0_9 = arith.constant 0 : index
    %c0_10 = arith.constant 0 : index
    %13 = vector.load %arg4[%c0_9, %c0_10] : memref<16x32xf32, #tpu.memory_space<vmem>>, vector<16x32xf32>
    %c0_11 = arith.constant 0 : index
    %c0_12 = arith.constant 0 : index
    %14 = vector.load %arg2[%c0_11, %c0_12] : memref<32x32xbf16, #tpu.memory_space<vmem>>, vector<32x32xbf16>
    %15 = arith.truncf %11 : vector<16x32xf32> to vector<16x32xbf16>
    %c0_13 = arith.constant 0 : index
    %c0_14 = arith.constant 0 : index
    %16 = vector.load %arg7[%c0_13, %c0_14] : memref<32x192xbf16, #tpu.memory_space<vmem>>, vector<32x192xbf16>
    %cst_15 = arith.constant dense<0.000000e+00> : vector<16x192xf32>
    %17 = tpu.matmul %15, %16, %cst_15 {dimension_numbers = #tpu.dot_dimension_numbers<[1], [0], [0], [1], [0, 0, 1, 1], [], []>} : vector<16x32xbf16>, vector<32x192xbf16>, vector<16x192xf32> -> vector<16x192xf32>
    %18 = vector.extract_strided_slice %17 {offsets = [0, 0], sizes = [16, 32], strides = [1, 1]} : vector<16x192xf32> to vector<16x32xf32>
    %19 = vector.extract_strided_slice %0 {offsets = [0, 0], sizes = [1, 32], strides = [1, 1]} : vector<19x32xf32> to vector<1x32xf32>
    %20 = vector.broadcast %19 : vector<1x32xf32> to vector<16x32xf32>
    %21 = arith.addf %18, %20 : vector<16x32xf32>
    %22 = vector.extract_strided_slice %17 {offsets = [0, 32], sizes = [16, 32], strides = [1, 1]} : vector<16x192xf32> to vector<16x32xf32>
    %23 = vector.extract_strided_slice %0 {offsets = [1, 0], sizes = [1, 32], strides = [1, 1]} : vector<19x32xf32> to vector<1x32xf32>
    %24 = vector.broadcast %23 : vector<1x32xf32> to vector<16x32xf32>
    %25 = arith.addf %22, %24 : vector<16x32xf32>
    %26 = vector.extract_strided_slice %17 {offsets = [0, 64], sizes = [16, 128], strides = [1, 1]} : vector<16x192xf32> to vector<16x128xf32>
    %27 = vector.extract_strided_slice %0 {offsets = [2, 0], sizes = [1, 32], strides = [1, 1]} : vector<19x32xf32> to vector<1x32xf32>
    %28 = arith.truncf %21 : vector<16x32xf32> to vector<16x32xbf16>
    %29 = arith.truncf %25 : vector<16x32xf32> to vector<16x32xbf16>
    %30 = arith.truncf %26 : vector<16x128xf32> to vector<16x128xbf16>
    %cst_16 = arith.constant 0.000000e+00 : f32
    %31 = vector.broadcast %cst_16 : f32 to vector<16x32xf32>
    %32 = vector.extract_strided_slice %28 {offsets = [0, 0], sizes = [16, 8], strides = [1, 1]} : vector<16x32xbf16> to vector<16x8xbf16>
    %33 = vector.extract_strided_slice %29 {offsets = [0, 0], sizes = [16, 8], strides = [1, 1]} : vector<16x32xbf16> to vector<16x8xbf16>
    %cst_17 = arith.constant dense<0.000000e+00> : vector<16x16xf32>
    %34 = tpu.matmul %32, %33, %cst_17 {dimension_numbers = #tpu.dot_dimension_numbers<[1], [1], [0], [0], [0, 0, 1, 0], [], []>} : vector<16x8xbf16>, vector<16x8xbf16>, vector<16x16xf32> -> vector<16x16xf32>
    %35 = arith.addf %34, %12 : vector<16x16xf32>
    %cst_18 = arith.constant dense<0xFF800000> : vector<16xf32>
    %36 = vector.multi_reduction <maximumf>, %35, %cst_18 [1] : vector<16x16xf32> to vector<16xf32>
    %37 = vector.shape_cast %36 : vector<16xf32> to vector<16x1xf32>
    %38 = vector.broadcast %37 : vector<16x1xf32> to vector<16x16xf32>
    %39 = arith.subf %35, %38 : vector<16x16xf32>
    %40 = math.exp %39 : vector<16x16xf32>
    %cst_19 = arith.constant dense<0.000000e+00> : vector<16xf32>
    %41 = vector.multi_reduction <add>, %40, %cst_19 [1] : vector<16x16xf32> to vector<16xf32>
    %42 = vector.shape_cast %41 : vector<16xf32> to vector<16x1xf32>
    %43 = tpu.reciprocal %42 {approx = true} : vector<16x1xf32> -> vector<16x1xf32>
    %44 = vector.broadcast %43 : vector<16x1xf32> to vector<16x16xf32>
    %45 = arith.mulf %40, %44 : vector<16x16xf32>
    %46 = arith.truncf %45 : vector<16x16xf32> to vector<16x16xbf16>
    %47 = vector.extract_strided_slice %30 {offsets = [0, 0], sizes = [16, 32], strides = [1, 1]} : vector<16x128xbf16> to vector<16x32xbf16>
    %cst_20 = arith.constant dense<0.000000e+00> : vector<16x32xf32>
    %48 = tpu.matmul %46, %47, %cst_20 {dimension_numbers = #tpu.dot_dimension_numbers<[1], [0], [0], [1], [0, 0, 1, 1], [], []>} : vector<16x16xbf16>, vector<16x32xbf16>, vector<16x32xf32> -> vector<16x32xf32>
    %49 = arith.addf %31, %48 : vector<16x32xf32>
    %50 = vector.extract_strided_slice %28 {offsets = [0, 8], sizes = [16, 8], strides = [1, 1]} : vector<16x32xbf16> to vector<16x8xbf16>
    %51 = vector.extract_strided_slice %29 {offsets = [0, 8], sizes = [16, 8], strides = [1, 1]} : vector<16x32xbf16> to vector<16x8xbf16>
    %cst_21 = arith.constant dense<0.000000e+00> : vector<16x16xf32>
    %52 = tpu.matmul %50, %51, %cst_21 {dimension_numbers = #tpu.dot_dimension_numbers<[1], [1], [0], [0], [0, 0, 1, 0], [], []>} : vector<16x8xbf16>, vector<16x8xbf16>, vector<16x16xf32> -> vector<16x16xf32>
    %53 = arith.addf %52, %12 : vector<16x16xf32>
    %cst_22 = arith.constant dense<0xFF800000> : vector<16xf32>
    %54 = vector.multi_reduction <maximumf>, %53, %cst_22 [1] : vector<16x16xf32> to vector<16xf32>
    %55 = vector.shape_cast %54 : vector<16xf32> to vector<16x1xf32>
    %56 = vector.broadcast %55 : vector<16x1xf32> to vector<16x16xf32>
    %57 = arith.subf %53, %56 : vector<16x16xf32>
    %58 = math.exp %57 : vector<16x16xf32>
    %cst_23 = arith.constant dense<0.000000e+00> : vector<16xf32>
    %59 = vector.multi_reduction <add>, %58, %cst_23 [1] : vector<16x16xf32> to vector<16xf32>
    %60 = vector.shape_cast %59 : vector<16xf32> to vector<16x1xf32>
    %61 = tpu.reciprocal %60 {approx = true} : vector<16x1xf32> -> vector<16x1xf32>
    %62 = vector.broadcast %61 : vector<16x1xf32> to vector<16x16xf32>
    %63 = arith.mulf %58, %62 : vector<16x16xf32>
    %64 = arith.truncf %63 : vector<16x16xf32> to vector<16x16xbf16>
    %65 = vector.extract_strided_slice %30 {offsets = [0, 32], sizes = [16, 32], strides = [1, 1]} : vector<16x128xbf16> to vector<16x32xbf16>
    %cst_24 = arith.constant dense<0.000000e+00> : vector<16x32xf32>
    %66 = tpu.matmul %64, %65, %cst_24 {dimension_numbers = #tpu.dot_dimension_numbers<[1], [0], [0], [1], [0, 0, 1, 1], [], []>} : vector<16x16xbf16>, vector<16x32xbf16>, vector<16x32xf32> -> vector<16x32xf32>
    %67 = arith.addf %49, %66 : vector<16x32xf32>
    %68 = vector.extract_strided_slice %28 {offsets = [0, 16], sizes = [16, 8], strides = [1, 1]} : vector<16x32xbf16> to vector<16x8xbf16>
    %69 = vector.extract_strided_slice %29 {offsets = [0, 16], sizes = [16, 8], strides = [1, 1]} : vector<16x32xbf16> to vector<16x8xbf16>
    %cst_25 = arith.constant dense<0.000000e+00> : vector<16x16xf32>
    %70 = tpu.matmul %68, %69, %cst_25 {dimension_numbers = #tpu.dot_dimension_numbers<[1], [1], [0], [0], [0, 0, 1, 0], [], []>} : vector<16x8xbf16>, vector<16x8xbf16>, vector<16x16xf32> -> vector<16x16xf32>
    %71 = arith.addf %70, %12 : vector<16x16xf32>
    %cst_26 = arith.constant dense<0xFF800000> : vector<16xf32>
    %72 = vector.multi_reduction <maximumf>, %71, %cst_26 [1] : vector<16x16xf32> to vector<16xf32>
    %73 = vector.shape_cast %72 : vector<16xf32> to vector<16x1xf32>
    %74 = vector.broadcast %73 : vector<16x1xf32> to vector<16x16xf32>
    %75 = arith.subf %71, %74 : vector<16x16xf32>
    %76 = math.exp %75 : vector<16x16xf32>
    %cst_27 = arith.constant dense<0.000000e+00> : vector<16xf32>
    %77 = vector.multi_reduction <add>, %76, %cst_27 [1] : vector<16x16xf32> to vector<16xf32>
    %78 = vector.shape_cast %77 : vector<16xf32> to vector<16x1xf32>
    %79 = tpu.reciprocal %78 {approx = true} : vector<16x1xf32> -> vector<16x1xf32>
    %80 = vector.broadcast %79 : vector<16x1xf32> to vector<16x16xf32>
    %81 = arith.mulf %76, %80 : vector<16x16xf32>
    %82 = arith.truncf %81 : vector<16x16xf32> to vector<16x16xbf16>
    %83 = vector.extract_strided_slice %30 {offsets = [0, 64], sizes = [16, 32], strides = [1, 1]} : vector<16x128xbf16> to vector<16x32xbf16>
    %cst_28 = arith.constant dense<0.000000e+00> : vector<16x32xf32>
    %84 = tpu.matmul %82, %83, %cst_28 {dimension_numbers = #tpu.dot_dimension_numbers<[1], [0], [0], [1], [0, 0, 1, 1], [], []>} : vector<16x16xbf16>, vector<16x32xbf16>, vector<16x32xf32> -> vector<16x32xf32>
    %85 = arith.addf %67, %84 : vector<16x32xf32>
    %86 = vector.extract_strided_slice %28 {offsets = [0, 24], sizes = [16, 8], strides = [1, 1]} : vector<16x32xbf16> to vector<16x8xbf16>
    %87 = vector.extract_strided_slice %29 {offsets = [0, 24], sizes = [16, 8], strides = [1, 1]} : vector<16x32xbf16> to vector<16x8xbf16>
    %cst_29 = arith.constant dense<0.000000e+00> : vector<16x16xf32>
    %88 = tpu.matmul %86, %87, %cst_29 {dimension_numbers = #tpu.dot_dimension_numbers<[1], [1], [0], [0], [0, 0, 1, 0], [], []>} : vector<16x8xbf16>, vector<16x8xbf16>, vector<16x16xf32> -> vector<16x16xf32>
    %89 = arith.addf %88, %12 : vector<16x16xf32>
    %cst_30 = arith.constant dense<0xFF800000> : vector<16xf32>
    %90 = vector.multi_reduction <maximumf>, %89, %cst_30 [1] : vector<16x16xf32> to vector<16xf32>
    %91 = vector.shape_cast %90 : vector<16xf32> to vector<16x1xf32>
    %92 = vector.broadcast %91 : vector<16x1xf32> to vector<16x16xf32>
    %93 = arith.subf %89, %92 : vector<16x16xf32>
    %94 = math.exp %93 : vector<16x16xf32>
    %cst_31 = arith.constant dense<0.000000e+00> : vector<16xf32>
    %95 = vector.multi_reduction <add>, %94, %cst_31 [1] : vector<16x16xf32> to vector<16xf32>
    %96 = vector.shape_cast %95 : vector<16xf32> to vector<16x1xf32>
    %97 = tpu.reciprocal %96 {approx = true} : vector<16x1xf32> -> vector<16x1xf32>
    %98 = vector.broadcast %97 : vector<16x1xf32> to vector<16x16xf32>
    %99 = arith.mulf %94, %98 : vector<16x16xf32>
    %100 = arith.truncf %99 : vector<16x16xf32> to vector<16x16xbf16>
    %101 = vector.extract_strided_slice %30 {offsets = [0, 96], sizes = [16, 32], strides = [1, 1]} : vector<16x128xbf16> to vector<16x32xbf16>
    %cst_32 = arith.constant dense<0.000000e+00> : vector<16x32xf32>
    %102 = tpu.matmul %100, %101, %cst_32 {dimension_numbers = #tpu.dot_dimension_numbers<[1], [0], [0], [1], [0, 0, 1, 1], [], []>} : vector<16x16xbf16>, vector<16x32xbf16>, vector<16x32xf32> -> vector<16x32xf32>
    %103 = arith.addf %85, %102 : vector<16x32xf32>
    %104 = vector.broadcast %27 : vector<1x32xf32> to vector<16x32xf32>
    %105 = arith.addf %103, %104 : vector<16x32xf32>
    %106 = vector.extract_strided_slice %0 {offsets = [3, 0], sizes = [1, 32], strides = [1, 1]} : vector<19x32xf32> to vector<1x32xf32>
    %107 = vector.extract_strided_slice %0 {offsets = [4, 0], sizes = [1, 32], strides = [1, 1]} : vector<19x32xf32> to vector<1x32xf32>
    %108 = arith.addf %11, %105 : vector<16x32xf32>
    %cst_33 = arith.constant dense<0.000000e+00> : vector<16xf32>
    %109 = vector.multi_reduction <add>, %108, %cst_33 [1] : vector<16x32xf32> to vector<16xf32>
    %110 = vector.shape_cast %109 : vector<16xf32> to vector<16x1xf32>
    %cst_34 = arith.constant 3.200000e+01 : f32
    %111 = vector.broadcast %cst_34 : f32 to vector<16x1xf32>
    %112 = arith.divf %110, %111 : vector<16x1xf32>
    %113 = vector.broadcast %112 : vector<16x1xf32> to vector<16x32xf32>
    %114 = arith.subf %108, %113 : vector<16x32xf32>
    %115 = arith.mulf %114, %114 : vector<16x32xf32>
    %cst_35 = arith.constant dense<0.000000e+00> : vector<16xf32>
    %116 = vector.multi_reduction <add>, %115, %cst_35 [1] : vector<16x32xf32> to vector<16xf32>
    %117 = vector.shape_cast %116 : vector<16xf32> to vector<16x1xf32>
    %cst_36 = arith.constant 3.200000e+01 : f32
    %118 = vector.broadcast %cst_36 : f32 to vector<16x1xf32>
    %119 = arith.divf %117, %118 : vector<16x1xf32>
    %120 = vector.broadcast %112 : vector<16x1xf32> to vector<16x32xf32>
    %121 = arith.subf %108, %120 : vector<16x32xf32>
    %cst_37 = arith.constant 9.99999974E-6 : f32
    %122 = vector.broadcast %cst_37 : f32 to vector<16x1xf32>
    %123 = arith.addf %119, %122 : vector<16x1xf32>
    %124 = math.rsqrt %123 : vector<16x1xf32>
    %125 = vector.broadcast %124 : vector<16x1xf32> to vector<16x32xf32>
    %126 = arith.mulf %121, %125 : vector<16x32xf32>
    %127 = vector.broadcast %106 : vector<1x32xf32> to vector<16x32xf32>
    %128 = arith.mulf %126, %127 : vector<16x32xf32>
    %129 = vector.broadcast %107 : vector<1x32xf32> to vector<16x32xf32>
    %130 = arith.addf %128, %129 : vector<16x32xf32>
    %131 = arith.truncf %130 : vector<16x32xf32> to vector<16x32xbf16>
    %c0_38 = arith.constant 0 : index
    %c0_39 = arith.constant 0 : index
    %c0_40 = arith.constant 0 : index
    %132 = vector.load %arg8[%c0_38, %c0_39, %c0_40] : memref<2x32x32xbf16, #tpu.memory_space<vmem>>, vector<1x32x32xbf16>
    %133 = vector.shape_cast %132 : vector<1x32x32xbf16> to vector<32x32xbf16>
    %cst_41 = arith.constant dense<0.000000e+00> : vector<16x32xf32>
    %134 = tpu.matmul %131, %133, %cst_41 {dimension_numbers = #tpu.dot_dimension_numbers<[1], [0], [0], [1], [0, 0, 1, 1], [], []>} : vector<16x32xbf16>, vector<32x32xbf16>, vector<16x32xf32> -> vector<16x32xf32>
    %135 = vector.extract_strided_slice %0 {offsets = [5, 0], sizes = [1, 32], strides = [1, 1]} : vector<19x32xf32> to vector<1x32xf32>
    %136 = vector.broadcast %135 : vector<1x32xf32> to vector<16x32xf32>
    %137 = arith.addf %134, %136 : vector<16x32xf32>
    %c0_42 = arith.constant 0 : index
    %c0_43 = arith.constant 0 : index
    %c0_44 = arith.constant 0 : index
    %138 = vector.load %arg9[%c0_42, %c0_43, %c0_44] : memref<2x32x160xbf16, #tpu.memory_space<vmem>>, vector<1x32x160xbf16>
    %139 = vector.shape_cast %138 : vector<1x32x160xbf16> to vector<32x160xbf16>
    %cst_45 = arith.constant dense<0.000000e+00> : vector<32x160xf32>
    %140 = tpu.matmul %14, %139, %cst_45 {dimension_numbers = #tpu.dot_dimension_numbers<[1], [0], [0], [1], [0, 0, 1, 1], [], []>} : vector<32x32xbf16>, vector<32x160xbf16>, vector<32x160xf32> -> vector<32x160xf32>
    %141 = vector.extract_strided_slice %140 {offsets = [0, 0], sizes = [32, 32], strides = [1, 1]} : vector<32x160xf32> to vector<32x32xf32>
    %142 = vector.extract_strided_slice %0 {offsets = [6, 0], sizes = [1, 32], strides = [1, 1]} : vector<19x32xf32> to vector<1x32xf32>
    %143 = vector.broadcast %142 : vector<1x32xf32> to vector<32x32xf32>
    %144 = arith.addf %141, %143 : vector<32x32xf32>
    %145 = vector.extract_strided_slice %140 {offsets = [0, 32], sizes = [32, 128], strides = [1, 1]} : vector<32x160xf32> to vector<32x128xf32>
    %146 = vector.extract_strided_slice %0 {offsets = [7, 0], sizes = [1, 32], strides = [1, 1]} : vector<19x32xf32> to vector<1x32xf32>
    %147 = arith.truncf %137 : vector<16x32xf32> to vector<16x32xbf16>
    %148 = arith.truncf %144 : vector<32x32xf32> to vector<32x32xbf16>
    %149 = arith.truncf %145 : vector<32x128xf32> to vector<32x128xbf16>
    %cst_46 = arith.constant 0.000000e+00 : f32
    %150 = vector.broadcast %cst_46 : f32 to vector<16x32xf32>
    %151 = vector.extract_strided_slice %147 {offsets = [0, 0], sizes = [16, 8], strides = [1, 1]} : vector<16x32xbf16> to vector<16x8xbf16>
    %152 = vector.extract_strided_slice %148 {offsets = [0, 0], sizes = [32, 8], strides = [1, 1]} : vector<32x32xbf16> to vector<32x8xbf16>
    %cst_47 = arith.constant dense<0.000000e+00> : vector<16x32xf32>
    %153 = tpu.matmul %151, %152, %cst_47 {dimension_numbers = #tpu.dot_dimension_numbers<[1], [1], [0], [0], [0, 0, 1, 0], [], []>} : vector<16x8xbf16>, vector<32x8xbf16>, vector<16x32xf32> -> vector<16x32xf32>
    %154 = arith.addf %153, %13 : vector<16x32xf32>
    %cst_48 = arith.constant dense<0xFF800000> : vector<16xf32>
    %155 = vector.multi_reduction <maximumf>, %154, %cst_48 [1] : vector<16x32xf32> to vector<16xf32>
    %156 = vector.shape_cast %155 : vector<16xf32> to vector<16x1xf32>
    %157 = vector.broadcast %156 : vector<16x1xf32> to vector<16x32xf32>
    %158 = arith.subf %154, %157 : vector<16x32xf32>
    %159 = math.exp %158 : vector<16x32xf32>
    %cst_49 = arith.constant dense<0.000000e+00> : vector<16xf32>
    %160 = vector.multi_reduction <add>, %159, %cst_49 [1] : vector<16x32xf32> to vector<16xf32>
    %161 = vector.shape_cast %160 : vector<16xf32> to vector<16x1xf32>
    %162 = tpu.reciprocal %161 {approx = true} : vector<16x1xf32> -> vector<16x1xf32>
    %163 = vector.broadcast %162 : vector<16x1xf32> to vector<16x32xf32>
    %164 = arith.mulf %159, %163 : vector<16x32xf32>
    %165 = arith.truncf %164 : vector<16x32xf32> to vector<16x32xbf16>
    %166 = vector.extract_strided_slice %149 {offsets = [0, 0], sizes = [32, 32], strides = [1, 1]} : vector<32x128xbf16> to vector<32x32xbf16>
    %cst_50 = arith.constant dense<0.000000e+00> : vector<16x32xf32>
    %167 = tpu.matmul %165, %166, %cst_50 {dimension_numbers = #tpu.dot_dimension_numbers<[1], [0], [0], [1], [0, 0, 1, 1], [], []>} : vector<16x32xbf16>, vector<32x32xbf16>, vector<16x32xf32> -> vector<16x32xf32>
    %168 = arith.addf %150, %167 : vector<16x32xf32>
    %169 = vector.extract_strided_slice %147 {offsets = [0, 8], sizes = [16, 8], strides = [1, 1]} : vector<16x32xbf16> to vector<16x8xbf16>
    %170 = vector.extract_strided_slice %148 {offsets = [0, 8], sizes = [32, 8], strides = [1, 1]} : vector<32x32xbf16> to vector<32x8xbf16>
    %cst_51 = arith.constant dense<0.000000e+00> : vector<16x32xf32>
    %171 = tpu.matmul %169, %170, %cst_51 {dimension_numbers = #tpu.dot_dimension_numbers<[1], [1], [0], [0], [0, 0, 1, 0], [], []>} : vector<16x8xbf16>, vector<32x8xbf16>, vector<16x32xf32> -> vector<16x32xf32>
    %172 = arith.addf %171, %13 : vector<16x32xf32>
    %cst_52 = arith.constant dense<0xFF800000> : vector<16xf32>
    %173 = vector.multi_reduction <maximumf>, %172, %cst_52 [1] : vector<16x32xf32> to vector<16xf32>
    %174 = vector.shape_cast %173 : vector<16xf32> to vector<16x1xf32>
    %175 = vector.broadcast %174 : vector<16x1xf32> to vector<16x32xf32>
    %176 = arith.subf %172, %175 : vector<16x32xf32>
    %177 = math.exp %176 : vector<16x32xf32>
    %cst_53 = arith.constant dense<0.000000e+00> : vector<16xf32>
    %178 = vector.multi_reduction <add>, %177, %cst_53 [1] : vector<16x32xf32> to vector<16xf32>
    %179 = vector.shape_cast %178 : vector<16xf32> to vector<16x1xf32>
    %180 = tpu.reciprocal %179 {approx = true} : vector<16x1xf32> -> vector<16x1xf32>
    %181 = vector.broadcast %180 : vector<16x1xf32> to vector<16x32xf32>
    %182 = arith.mulf %177, %181 : vector<16x32xf32>
    %183 = arith.truncf %182 : vector<16x32xf32> to vector<16x32xbf16>
    %184 = vector.extract_strided_slice %149 {offsets = [0, 32], sizes = [32, 32], strides = [1, 1]} : vector<32x128xbf16> to vector<32x32xbf16>
    %cst_54 = arith.constant dense<0.000000e+00> : vector<16x32xf32>
    %185 = tpu.matmul %183, %184, %cst_54 {dimension_numbers = #tpu.dot_dimension_numbers<[1], [0], [0], [1], [0, 0, 1, 1], [], []>} : vector<16x32xbf16>, vector<32x32xbf16>, vector<16x32xf32> -> vector<16x32xf32>
    %186 = arith.addf %168, %185 : vector<16x32xf32>
    %187 = vector.extract_strided_slice %147 {offsets = [0, 16], sizes = [16, 8], strides = [1, 1]} : vector<16x32xbf16> to vector<16x8xbf16>
    %188 = vector.extract_strided_slice %148 {offsets = [0, 16], sizes = [32, 8], strides = [1, 1]} : vector<32x32xbf16> to vector<32x8xbf16>
    %cst_55 = arith.constant dense<0.000000e+00> : vector<16x32xf32>
    %189 = tpu.matmul %187, %188, %cst_55 {dimension_numbers = #tpu.dot_dimension_numbers<[1], [1], [0], [0], [0, 0, 1, 0], [], []>} : vector<16x8xbf16>, vector<32x8xbf16>, vector<16x32xf32> -> vector<16x32xf32>
    %190 = arith.addf %189, %13 : vector<16x32xf32>
    %cst_56 = arith.constant dense<0xFF800000> : vector<16xf32>
    %191 = vector.multi_reduction <maximumf>, %190, %cst_56 [1] : vector<16x32xf32> to vector<16xf32>
    %192 = vector.shape_cast %191 : vector<16xf32> to vector<16x1xf32>
    %193 = vector.broadcast %192 : vector<16x1xf32> to vector<16x32xf32>
    %194 = arith.subf %190, %193 : vector<16x32xf32>
    %195 = math.exp %194 : vector<16x32xf32>
    %cst_57 = arith.constant dense<0.000000e+00> : vector<16xf32>
    %196 = vector.multi_reduction <add>, %195, %cst_57 [1] : vector<16x32xf32> to vector<16xf32>
    %197 = vector.shape_cast %196 : vector<16xf32> to vector<16x1xf32>
    %198 = tpu.reciprocal %197 {approx = true} : vector<16x1xf32> -> vector<16x1xf32>
    %199 = vector.broadcast %198 : vector<16x1xf32> to vector<16x32xf32>
    %200 = arith.mulf %195, %199 : vector<16x32xf32>
    %201 = arith.truncf %200 : vector<16x32xf32> to vector<16x32xbf16>
    %202 = vector.extract_strided_slice %149 {offsets = [0, 64], sizes = [32, 32], strides = [1, 1]} : vector<32x128xbf16> to vector<32x32xbf16>
    %cst_58 = arith.constant dense<0.000000e+00> : vector<16x32xf32>
    %203 = tpu.matmul %201, %202, %cst_58 {dimension_numbers = #tpu.dot_dimension_numbers<[1], [0], [0], [1], [0, 0, 1, 1], [], []>} : vector<16x32xbf16>, vector<32x32xbf16>, vector<16x32xf32> -> vector<16x32xf32>
    %204 = arith.addf %186, %203 : vector<16x32xf32>
    %205 = vector.extract_strided_slice %147 {offsets = [0, 24], sizes = [16, 8], strides = [1, 1]} : vector<16x32xbf16> to vector<16x8xbf16>
    %206 = vector.extract_strided_slice %148 {offsets = [0, 24], sizes = [32, 8], strides = [1, 1]} : vector<32x32xbf16> to vector<32x8xbf16>
    %cst_59 = arith.constant dense<0.000000e+00> : vector<16x32xf32>
    %207 = tpu.matmul %205, %206, %cst_59 {dimension_numbers = #tpu.dot_dimension_numbers<[1], [1], [0], [0], [0, 0, 1, 0], [], []>} : vector<16x8xbf16>, vector<32x8xbf16>, vector<16x32xf32> -> vector<16x32xf32>
    %208 = arith.addf %207, %13 : vector<16x32xf32>
    %cst_60 = arith.constant dense<0xFF800000> : vector<16xf32>
    %209 = vector.multi_reduction <maximumf>, %208, %cst_60 [1] : vector<16x32xf32> to vector<16xf32>
    %210 = vector.shape_cast %209 : vector<16xf32> to vector<16x1xf32>
    %211 = vector.broadcast %210 : vector<16x1xf32> to vector<16x32xf32>
    %212 = arith.subf %208, %211 : vector<16x32xf32>
    %213 = math.exp %212 : vector<16x32xf32>
    %cst_61 = arith.constant dense<0.000000e+00> : vector<16xf32>
    %214 = vector.multi_reduction <add>, %213, %cst_61 [1] : vector<16x32xf32> to vector<16xf32>
    %215 = vector.shape_cast %214 : vector<16xf32> to vector<16x1xf32>
    %216 = tpu.reciprocal %215 {approx = true} : vector<16x1xf32> -> vector<16x1xf32>
    %217 = vector.broadcast %216 : vector<16x1xf32> to vector<16x32xf32>
    %218 = arith.mulf %213, %217 : vector<16x32xf32>
    %219 = arith.truncf %218 : vector<16x32xf32> to vector<16x32xbf16>
    %220 = vector.extract_strided_slice %149 {offsets = [0, 96], sizes = [32, 32], strides = [1, 1]} : vector<32x128xbf16> to vector<32x32xbf16>
    %cst_62 = arith.constant dense<0.000000e+00> : vector<16x32xf32>
    %221 = tpu.matmul %219, %220, %cst_62 {dimension_numbers = #tpu.dot_dimension_numbers<[1], [0], [0], [1], [0, 0, 1, 1], [], []>} : vector<16x32xbf16>, vector<32x32xbf16>, vector<16x32xf32> -> vector<16x32xf32>
    %222 = arith.addf %204, %221 : vector<16x32xf32>
    %223 = vector.broadcast %146 : vector<1x32xf32> to vector<16x32xf32>
    %224 = arith.addf %222, %223 : vector<16x32xf32>
    %225 = vector.extract_strided_slice %0 {offsets = [8, 0], sizes = [1, 32], strides = [1, 1]} : vector<19x32xf32> to vector<1x32xf32>
    %226 = vector.extract_strided_slice %0 {offsets = [9, 0], sizes = [1, 32], strides = [1, 1]} : vector<19x32xf32> to vector<1x32xf32>
    %227 = arith.addf %130, %224 : vector<16x32xf32>
    %cst_63 = arith.constant dense<0.000000e+00> : vector<16xf32>
    %228 = vector.multi_reduction <add>, %227, %cst_63 [1] : vector<16x32xf32> to vector<16xf32>
    %229 = vector.shape_cast %228 : vector<16xf32> to vector<16x1xf32>
    %cst_64 = arith.constant 3.200000e+01 : f32
    %230 = vector.broadcast %cst_64 : f32 to vector<16x1xf32>
    %231 = arith.divf %229, %230 : vector<16x1xf32>
    %232 = vector.broadcast %231 : vector<16x1xf32> to vector<16x32xf32>
    %233 = arith.subf %227, %232 : vector<16x32xf32>
    %234 = arith.mulf %233, %233 : vector<16x32xf32>
    %cst_65 = arith.constant dense<0.000000e+00> : vector<16xf32>
    %235 = vector.multi_reduction <add>, %234, %cst_65 [1] : vector<16x32xf32> to vector<16xf32>
    %236 = vector.shape_cast %235 : vector<16xf32> to vector<16x1xf32>
    %cst_66 = arith.constant 3.200000e+01 : f32
    %237 = vector.broadcast %cst_66 : f32 to vector<16x1xf32>
    %238 = arith.divf %236, %237 : vector<16x1xf32>
    %239 = vector.broadcast %231 : vector<16x1xf32> to vector<16x32xf32>
    %240 = arith.subf %227, %239 : vector<16x32xf32>
    %cst_67 = arith.constant 9.99999997E-7 : f32
    %241 = vector.broadcast %cst_67 : f32 to vector<16x1xf32>
    %242 = arith.addf %238, %241 : vector<16x1xf32>
    %243 = math.rsqrt %242 : vector<16x1xf32>
    %244 = vector.broadcast %243 : vector<16x1xf32> to vector<16x32xf32>
    %245 = arith.mulf %240, %244 : vector<16x32xf32>
    %246 = vector.broadcast %225 : vector<1x32xf32> to vector<16x32xf32>
    %247 = arith.mulf %245, %246 : vector<16x32xf32>
    %248 = vector.broadcast %226 : vector<1x32xf32> to vector<16x32xf32>
    %249 = arith.addf %247, %248 : vector<16x32xf32>
    %250 = arith.truncf %249 : vector<16x32xf32> to vector<16x32xbf16>
    %c0_68 = arith.constant 0 : index
    %c0_69 = arith.constant 0 : index
    %c0_70 = arith.constant 0 : index
    %251 = vector.load %arg10[%c0_68, %c0_69, %c0_70] : memref<2x32x64xbf16, #tpu.memory_space<vmem>>, vector<1x32x64xbf16>
    %252 = vector.shape_cast %251 : vector<1x32x64xbf16> to vector<32x64xbf16>
    %cst_71 = arith.constant dense<0.000000e+00> : vector<16x64xf32>
    %253 = tpu.matmul %250, %252, %cst_71 {dimension_numbers = #tpu.dot_dimension_numbers<[1], [0], [0], [1], [0, 0, 1, 1], [], []>} : vector<16x32xbf16>, vector<32x64xbf16>, vector<16x64xf32> -> vector<16x64xf32>
    %cst_72 = arith.constant 5.000000e-01 : f32
    %254 = vector.broadcast %cst_72 : f32 to vector<16x64xf32>
    %255 = arith.mulf %254, %253 : vector<16x64xf32>
    %cst_73 = arith.constant 0.707106769 : f32
    %256 = vector.broadcast %cst_73 : f32 to vector<16x64xf32>
    %257 = arith.mulf %253, %256 : vector<16x64xf32>
    %258 = math.erf %257 : vector<16x64xf32>
    %cst_74 = arith.constant 1.000000e+00 : f32
    %259 = vector.broadcast %cst_74 : f32 to vector<16x64xf32>
    %260 = arith.addf %259, %258 : vector<16x64xf32>
    %261 = arith.mulf %255, %260 : vector<16x64xf32>
    %262 = arith.truncf %261 : vector<16x64xf32> to vector<16x64xbf16>
    %c0_75 = arith.constant 0 : index
    %c0_76 = arith.constant 0 : index
    %c0_77 = arith.constant 0 : index
    %263 = vector.load %arg11[%c0_75, %c0_76, %c0_77] : memref<2x64x32xbf16, #tpu.memory_space<vmem>>, vector<1x64x32xbf16>
    %264 = vector.shape_cast %263 : vector<1x64x32xbf16> to vector<64x32xbf16>
    %cst_78 = arith.constant dense<0.000000e+00> : vector<16x32xf32>
    %265 = tpu.matmul %262, %264, %cst_78 {dimension_numbers = #tpu.dot_dimension_numbers<[1], [0], [0], [1], [0, 0, 1, 1], [], []>} : vector<16x64xbf16>, vector<64x32xbf16>, vector<16x32xf32> -> vector<16x32xf32>
    %266 = vector.extract_strided_slice %0 {offsets = [10, 0], sizes = [1, 32], strides = [1, 1]} : vector<19x32xf32> to vector<1x32xf32>
    %267 = vector.extract_strided_slice %0 {offsets = [11, 0], sizes = [1, 32], strides = [1, 1]} : vector<19x32xf32> to vector<1x32xf32>
    %268 = arith.addf %249, %265 : vector<16x32xf32>
    %cst_79 = arith.constant dense<0.000000e+00> : vector<16xf32>
    %269 = vector.multi_reduction <add>, %268, %cst_79 [1] : vector<16x32xf32> to vector<16xf32>
    %270 = vector.shape_cast %269 : vector<16xf32> to vector<16x1xf32>
    %cst_80 = arith.constant 3.200000e+01 : f32
    %271 = vector.broadcast %cst_80 : f32 to vector<16x1xf32>
    %272 = arith.divf %270, %271 : vector<16x1xf32>
    %273 = vector.broadcast %272 : vector<16x1xf32> to vector<16x32xf32>
    %274 = arith.subf %268, %273 : vector<16x32xf32>
    %275 = arith.mulf %274, %274 : vector<16x32xf32>
    %cst_81 = arith.constant dense<0.000000e+00> : vector<16xf32>
    %276 = vector.multi_reduction <add>, %275, %cst_81 [1] : vector<16x32xf32> to vector<16xf32>
    %277 = vector.shape_cast %276 : vector<16xf32> to vector<16x1xf32>
    %cst_82 = arith.constant 3.200000e+01 : f32
    %278 = vector.broadcast %cst_82 : f32 to vector<16x1xf32>
    %279 = arith.divf %277, %278 : vector<16x1xf32>
    %280 = vector.broadcast %272 : vector<16x1xf32> to vector<16x32xf32>
    %281 = arith.subf %268, %280 : vector<16x32xf32>
    %cst_83 = arith.constant 9.99999997E-7 : f32
    %282 = vector.broadcast %cst_83 : f32 to vector<16x1xf32>
    %283 = arith.addf %279, %282 : vector<16x1xf32>
    %284 = math.rsqrt %283 : vector<16x1xf32>
    %285 = vector.broadcast %284 : vector<16x1xf32> to vector<16x32xf32>
    %286 = arith.mulf %281, %285 : vector<16x32xf32>
    %287 = vector.broadcast %266 : vector<1x32xf32> to vector<16x32xf32>
    %288 = arith.mulf %286, %287 : vector<16x32xf32>
    %289 = vector.broadcast %267 : vector<1x32xf32> to vector<16x32xf32>
    %290 = arith.addf %288, %289 : vector<16x32xf32>
    %291 = arith.truncf %290 : vector<16x32xf32> to vector<16x32xbf16>
    %c1 = arith.constant 1 : index
    %c0_84 = arith.constant 0 : index
    %c0_85 = arith.constant 0 : index
    %292 = vector.load %arg8[%c1, %c0_84, %c0_85] : memref<2x32x32xbf16, #tpu.memory_space<vmem>>, vector<1x32x32xbf16>
    %293 = vector.shape_cast %292 : vector<1x32x32xbf16> to vector<32x32xbf16>
    %cst_86 = arith.constant dense<0.000000e+00> : vector<16x32xf32>
    %294 = tpu.matmul %291, %293, %cst_86 {dimension_numbers = #tpu.dot_dimension_numbers<[1], [0], [0], [1], [0, 0, 1, 1], [], []>} : vector<16x32xbf16>, vector<32x32xbf16>, vector<16x32xf32> -> vector<16x32xf32>
    %295 = vector.extract_strided_slice %0 {offsets = [12, 0], sizes = [1, 32], strides = [1, 1]} : vector<19x32xf32> to vector<1x32xf32>
    %296 = vector.broadcast %295 : vector<1x32xf32> to vector<16x32xf32>
    %297 = arith.addf %294, %296 : vector<16x32xf32>
    %c1_87 = arith.constant 1 : index
    %c0_88 = arith.constant 0 : index
    %c0_89 = arith.constant 0 : index
    %298 = vector.load %arg9[%c1_87, %c0_88, %c0_89] : memref<2x32x160xbf16, #tpu.memory_space<vmem>>, vector<1x32x160xbf16>
    %299 = vector.shape_cast %298 : vector<1x32x160xbf16> to vector<32x160xbf16>
    %cst_90 = arith.constant dense<0.000000e+00> : vector<32x160xf32>
    %300 = tpu.matmul %14, %299, %cst_90 {dimension_numbers = #tpu.dot_dimension_numbers<[1], [0], [0], [1], [0, 0, 1, 1], [], []>} : vector<32x32xbf16>, vector<32x160xbf16>, vector<32x160xf32> -> vector<32x160xf32>
    %301 = vector.extract_strided_slice %300 {offsets = [0, 0], sizes = [32, 32], strides = [1, 1]} : vector<32x160xf32> to vector<32x32xf32>
    %302 = vector.extract_strided_slice %0 {offsets = [13, 0], sizes = [1, 32], strides = [1, 1]} : vector<19x32xf32> to vector<1x32xf32>
    %303 = vector.broadcast %302 : vector<1x32xf32> to vector<32x32xf32>
    %304 = arith.addf %301, %303 : vector<32x32xf32>
    %305 = vector.extract_strided_slice %300 {offsets = [0, 32], sizes = [32, 128], strides = [1, 1]} : vector<32x160xf32> to vector<32x128xf32>
    %306 = vector.extract_strided_slice %0 {offsets = [14, 0], sizes = [1, 32], strides = [1, 1]} : vector<19x32xf32> to vector<1x32xf32>
    %307 = arith.truncf %297 : vector<16x32xf32> to vector<16x32xbf16>
    %308 = arith.truncf %304 : vector<32x32xf32> to vector<32x32xbf16>
    %309 = arith.truncf %305 : vector<32x128xf32> to vector<32x128xbf16>
    %cst_91 = arith.constant 0.000000e+00 : f32
    %310 = vector.broadcast %cst_91 : f32 to vector<16x32xf32>
    %311 = vector.extract_strided_slice %307 {offsets = [0, 0], sizes = [16, 8], strides = [1, 1]} : vector<16x32xbf16> to vector<16x8xbf16>
    %312 = vector.extract_strided_slice %308 {offsets = [0, 0], sizes = [32, 8], strides = [1, 1]} : vector<32x32xbf16> to vector<32x8xbf16>
    %cst_92 = arith.constant dense<0.000000e+00> : vector<16x32xf32>
    %313 = tpu.matmul %311, %312, %cst_92 {dimension_numbers = #tpu.dot_dimension_numbers<[1], [1], [0], [0], [0, 0, 1, 0], [], []>} : vector<16x8xbf16>, vector<32x8xbf16>, vector<16x32xf32> -> vector<16x32xf32>
    %314 = arith.addf %313, %13 : vector<16x32xf32>
    %cst_93 = arith.constant dense<0xFF800000> : vector<16xf32>
    %315 = vector.multi_reduction <maximumf>, %314, %cst_93 [1] : vector<16x32xf32> to vector<16xf32>
    %316 = vector.shape_cast %315 : vector<16xf32> to vector<16x1xf32>
    %317 = vector.broadcast %316 : vector<16x1xf32> to vector<16x32xf32>
    %318 = arith.subf %314, %317 : vector<16x32xf32>
    %319 = math.exp %318 : vector<16x32xf32>
    %cst_94 = arith.constant dense<0.000000e+00> : vector<16xf32>
    %320 = vector.multi_reduction <add>, %319, %cst_94 [1] : vector<16x32xf32> to vector<16xf32>
    %321 = vector.shape_cast %320 : vector<16xf32> to vector<16x1xf32>
    %322 = tpu.reciprocal %321 {approx = true} : vector<16x1xf32> -> vector<16x1xf32>
    %323 = vector.broadcast %322 : vector<16x1xf32> to vector<16x32xf32>
    %324 = arith.mulf %319, %323 : vector<16x32xf32>
    %325 = arith.truncf %324 : vector<16x32xf32> to vector<16x32xbf16>
    %326 = vector.extract_strided_slice %309 {offsets = [0, 0], sizes = [32, 32], strides = [1, 1]} : vector<32x128xbf16> to vector<32x32xbf16>
    %cst_95 = arith.constant dense<0.000000e+00> : vector<16x32xf32>
    %327 = tpu.matmul %325, %326, %cst_95 {dimension_numbers = #tpu.dot_dimension_numbers<[1], [0], [0], [1], [0, 0, 1, 1], [], []>} : vector<16x32xbf16>, vector<32x32xbf16>, vector<16x32xf32> -> vector<16x32xf32>
    %328 = arith.addf %310, %327 : vector<16x32xf32>
    %329 = vector.extract_strided_slice %307 {offsets = [0, 8], sizes = [16, 8], strides = [1, 1]} : vector<16x32xbf16> to vector<16x8xbf16>
    %330 = vector.extract_strided_slice %308 {offsets = [0, 8], sizes = [32, 8], strides = [1, 1]} : vector<32x32xbf16> to vector<32x8xbf16>
    %cst_96 = arith.constant dense<0.000000e+00> : vector<16x32xf32>
    %331 = tpu.matmul %329, %330, %cst_96 {dimension_numbers = #tpu.dot_dimension_numbers<[1], [1], [0], [0], [0, 0, 1, 0], [], []>} : vector<16x8xbf16>, vector<32x8xbf16>, vector<16x32xf32> -> vector<16x32xf32>
    %332 = arith.addf %331, %13 : vector<16x32xf32>
    %cst_97 = arith.constant dense<0xFF800000> : vector<16xf32>
    %333 = vector.multi_reduction <maximumf>, %332, %cst_97 [1] : vector<16x32xf32> to vector<16xf32>
    %334 = vector.shape_cast %333 : vector<16xf32> to vector<16x1xf32>
    %335 = vector.broadcast %334 : vector<16x1xf32> to vector<16x32xf32>
    %336 = arith.subf %332, %335 : vector<16x32xf32>
    %337 = math.exp %336 : vector<16x32xf32>
    %cst_98 = arith.constant dense<0.000000e+00> : vector<16xf32>
    %338 = vector.multi_reduction <add>, %337, %cst_98 [1] : vector<16x32xf32> to vector<16xf32>
    %339 = vector.shape_cast %338 : vector<16xf32> to vector<16x1xf32>
    %340 = tpu.reciprocal %339 {approx = true} : vector<16x1xf32> -> vector<16x1xf32>
    %341 = vector.broadcast %340 : vector<16x1xf32> to vector<16x32xf32>
    %342 = arith.mulf %337, %341 : vector<16x32xf32>
    %343 = arith.truncf %342 : vector<16x32xf32> to vector<16x32xbf16>
    %344 = vector.extract_strided_slice %309 {offsets = [0, 32], sizes = [32, 32], strides = [1, 1]} : vector<32x128xbf16> to vector<32x32xbf16>
    %cst_99 = arith.constant dense<0.000000e+00> : vector<16x32xf32>
    %345 = tpu.matmul %343, %344, %cst_99 {dimension_numbers = #tpu.dot_dimension_numbers<[1], [0], [0], [1], [0, 0, 1, 1], [], []>} : vector<16x32xbf16>, vector<32x32xbf16>, vector<16x32xf32> -> vector<16x32xf32>
    %346 = arith.addf %328, %345 : vector<16x32xf32>
    %347 = vector.extract_strided_slice %307 {offsets = [0, 16], sizes = [16, 8], strides = [1, 1]} : vector<16x32xbf16> to vector<16x8xbf16>
    %348 = vector.extract_strided_slice %308 {offsets = [0, 16], sizes = [32, 8], strides = [1, 1]} : vector<32x32xbf16> to vector<32x8xbf16>
    %cst_100 = arith.constant dense<0.000000e+00> : vector<16x32xf32>
    %349 = tpu.matmul %347, %348, %cst_100 {dimension_numbers = #tpu.dot_dimension_numbers<[1], [1], [0], [0], [0, 0, 1, 0], [], []>} : vector<16x8xbf16>, vector<32x8xbf16>, vector<16x32xf32> -> vector<16x32xf32>
    %350 = arith.addf %349, %13 : vector<16x32xf32>
    %cst_101 = arith.constant dense<0xFF800000> : vector<16xf32>
    %351 = vector.multi_reduction <maximumf>, %350, %cst_101 [1] : vector<16x32xf32> to vector<16xf32>
    %352 = vector.shape_cast %351 : vector<16xf32> to vector<16x1xf32>
    %353 = vector.broadcast %352 : vector<16x1xf32> to vector<16x32xf32>
    %354 = arith.subf %350, %353 : vector<16x32xf32>
    %355 = math.exp %354 : vector<16x32xf32>
    %cst_102 = arith.constant dense<0.000000e+00> : vector<16xf32>
    %356 = vector.multi_reduction <add>, %355, %cst_102 [1] : vector<16x32xf32> to vector<16xf32>
    %357 = vector.shape_cast %356 : vector<16xf32> to vector<16x1xf32>
    %358 = tpu.reciprocal %357 {approx = true} : vector<16x1xf32> -> vector<16x1xf32>
    %359 = vector.broadcast %358 : vector<16x1xf32> to vector<16x32xf32>
    %360 = arith.mulf %355, %359 : vector<16x32xf32>
    %361 = arith.truncf %360 : vector<16x32xf32> to vector<16x32xbf16>
    %362 = vector.extract_strided_slice %309 {offsets = [0, 64], sizes = [32, 32], strides = [1, 1]} : vector<32x128xbf16> to vector<32x32xbf16>
    %cst_103 = arith.constant dense<0.000000e+00> : vector<16x32xf32>
    %363 = tpu.matmul %361, %362, %cst_103 {dimension_numbers = #tpu.dot_dimension_numbers<[1], [0], [0], [1], [0, 0, 1, 1], [], []>} : vector<16x32xbf16>, vector<32x32xbf16>, vector<16x32xf32> -> vector<16x32xf32>
    %364 = arith.addf %346, %363 : vector<16x32xf32>
    %365 = vector.extract_strided_slice %307 {offsets = [0, 24], sizes = [16, 8], strides = [1, 1]} : vector<16x32xbf16> to vector<16x8xbf16>
    %366 = vector.extract_strided_slice %308 {offsets = [0, 24], sizes = [32, 8], strides = [1, 1]} : vector<32x32xbf16> to vector<32x8xbf16>
    %cst_104 = arith.constant dense<0.000000e+00> : vector<16x32xf32>
    %367 = tpu.matmul %365, %366, %cst_104 {dimension_numbers = #tpu.dot_dimension_numbers<[1], [1], [0], [0], [0, 0, 1, 0], [], []>} : vector<16x8xbf16>, vector<32x8xbf16>, vector<16x32xf32> -> vector<16x32xf32>
    %368 = arith.addf %367, %13 : vector<16x32xf32>
    %cst_105 = arith.constant dense<0xFF800000> : vector<16xf32>
    %369 = vector.multi_reduction <maximumf>, %368, %cst_105 [1] : vector<16x32xf32> to vector<16xf32>
    %370 = vector.shape_cast %369 : vector<16xf32> to vector<16x1xf32>
    %371 = vector.broadcast %370 : vector<16x1xf32> to vector<16x32xf32>
    %372 = arith.subf %368, %371 : vector<16x32xf32>
    %373 = math.exp %372 : vector<16x32xf32>
    %cst_106 = arith.constant dense<0.000000e+00> : vector<16xf32>
    %374 = vector.multi_reduction <add>, %373, %cst_106 [1] : vector<16x32xf32> to vector<16xf32>
    %375 = vector.shape_cast %374 : vector<16xf32> to vector<16x1xf32>
    %376 = tpu.reciprocal %375 {approx = true} : vector<16x1xf32> -> vector<16x1xf32>
    %377 = vector.broadcast %376 : vector<16x1xf32> to vector<16x32xf32>
    %378 = arith.mulf %373, %377 : vector<16x32xf32>
    %379 = arith.truncf %378 : vector<16x32xf32> to vector<16x32xbf16>
    %380 = vector.extract_strided_slice %309 {offsets = [0, 96], sizes = [32, 32], strides = [1, 1]} : vector<32x128xbf16> to vector<32x32xbf16>
    %cst_107 = arith.constant dense<0.000000e+00> : vector<16x32xf32>
    %381 = tpu.matmul %379, %380, %cst_107 {dimension_numbers = #tpu.dot_dimension_numbers<[1], [0], [0], [1], [0, 0, 1, 1], [], []>} : vector<16x32xbf16>, vector<32x32xbf16>, vector<16x32xf32> -> vector<16x32xf32>
    %382 = arith.addf %364, %381 : vector<16x32xf32>
    %383 = vector.broadcast %306 : vector<1x32xf32> to vector<16x32xf32>
    %384 = arith.addf %382, %383 : vector<16x32xf32>
    %385 = vector.extract_strided_slice %0 {offsets = [15, 0], sizes = [1, 32], strides = [1, 1]} : vector<19x32xf32> to vector<1x32xf32>
    %386 = vector.extract_strided_slice %0 {offsets = [16, 0], sizes = [1, 32], strides = [1, 1]} : vector<19x32xf32> to vector<1x32xf32>
    %387 = arith.addf %290, %384 : vector<16x32xf32>
    %cst_108 = arith.constant dense<0.000000e+00> : vector<16xf32>
    %388 = vector.multi_reduction <add>, %387, %cst_108 [1] : vector<16x32xf32> to vector<16xf32>
    %389 = vector.shape_cast %388 : vector<16xf32> to vector<16x1xf32>
    %cst_109 = arith.constant 3.200000e+01 : f32
    %390 = vector.broadcast %cst_109 : f32 to vector<16x1xf32>
    %391 = arith.divf %389, %390 : vector<16x1xf32>
    %392 = vector.broadcast %391 : vector<16x1xf32> to vector<16x32xf32>
    %393 = arith.subf %387, %392 : vector<16x32xf32>
    %394 = arith.mulf %393, %393 : vector<16x32xf32>
    %cst_110 = arith.constant dense<0.000000e+00> : vector<16xf32>
    %395 = vector.multi_reduction <add>, %394, %cst_110 [1] : vector<16x32xf32> to vector<16xf32>
    %396 = vector.shape_cast %395 : vector<16xf32> to vector<16x1xf32>
    %cst_111 = arith.constant 3.200000e+01 : f32
    %397 = vector.broadcast %cst_111 : f32 to vector<16x1xf32>
    %398 = arith.divf %396, %397 : vector<16x1xf32>
    %399 = vector.broadcast %391 : vector<16x1xf32> to vector<16x32xf32>
    %400 = arith.subf %387, %399 : vector<16x32xf32>
    %cst_112 = arith.constant 9.99999997E-7 : f32
    %401 = vector.broadcast %cst_112 : f32 to vector<16x1xf32>
    %402 = arith.addf %398, %401 : vector<16x1xf32>
    %403 = math.rsqrt %402 : vector<16x1xf32>
    %404 = vector.broadcast %403 : vector<16x1xf32> to vector<16x32xf32>
    %405 = arith.mulf %400, %404 : vector<16x32xf32>
    %406 = vector.broadcast %385 : vector<1x32xf32> to vector<16x32xf32>
    %407 = arith.mulf %405, %406 : vector<16x32xf32>
    %408 = vector.broadcast %386 : vector<1x32xf32> to vector<16x32xf32>
    %409 = arith.addf %407, %408 : vector<16x32xf32>
    %410 = arith.truncf %409 : vector<16x32xf32> to vector<16x32xbf16>
    %c1_113 = arith.constant 1 : index
    %c0_114 = arith.constant 0 : index
    %c0_115 = arith.constant 0 : index
    %411 = vector.load %arg10[%c1_113, %c0_114, %c0_115] : memref<2x32x64xbf16, #tpu.memory_space<vmem>>, vector<1x32x64xbf16>
    %412 = vector.shape_cast %411 : vector<1x32x64xbf16> to vector<32x64xbf16>
    %cst_116 = arith.constant dense<0.000000e+00> : vector<16x64xf32>
    %413 = tpu.matmul %410, %412, %cst_116 {dimension_numbers = #tpu.dot_dimension_numbers<[1], [0], [0], [1], [0, 0, 1, 1], [], []>} : vector<16x32xbf16>, vector<32x64xbf16>, vector<16x64xf32> -> vector<16x64xf32>
    %cst_117 = arith.constant 5.000000e-01 : f32
    %414 = vector.broadcast %cst_117 : f32 to vector<16x64xf32>
    %415 = arith.mulf %414, %413 : vector<16x64xf32>
    %cst_118 = arith.constant 0.707106769 : f32
    %416 = vector.broadcast %cst_118 : f32 to vector<16x64xf32>
    %417 = arith.mulf %413, %416 : vector<16x64xf32>
    %418 = math.erf %417 : vector<16x64xf32>
    %cst_119 = arith.constant 1.000000e+00 : f32
    %419 = vector.broadcast %cst_119 : f32 to vector<16x64xf32>
    %420 = arith.addf %419, %418 : vector<16x64xf32>
    %421 = arith.mulf %415, %420 : vector<16x64xf32>
    %422 = arith.truncf %421 : vector<16x64xf32> to vector<16x64xbf16>
    %c1_120 = arith.constant 1 : index
    %c0_121 = arith.constant 0 : index
    %c0_122 = arith.constant 0 : index
    %423 = vector.load %arg11[%c1_120, %c0_121, %c0_122] : memref<2x64x32xbf16, #tpu.memory_space<vmem>>, vector<1x64x32xbf16>
    %424 = vector.shape_cast %423 : vector<1x64x32xbf16> to vector<64x32xbf16>
    %cst_123 = arith.constant dense<0.000000e+00> : vector<16x32xf32>
    %425 = tpu.matmul %422, %424, %cst_123 {dimension_numbers = #tpu.dot_dimension_numbers<[1], [0], [0], [1], [0, 0, 1, 1], [], []>} : vector<16x64xbf16>, vector<64x32xbf16>, vector<16x32xf32> -> vector<16x32xf32>
    %426 = vector.extract_strided_slice %0 {offsets = [17, 0], sizes = [1, 32], strides = [1, 1]} : vector<19x32xf32> to vector<1x32xf32>
    %427 = vector.extract_strided_slice %0 {offsets = [18, 0], sizes = [1, 32], strides = [1, 1]} : vector<19x32xf32> to vector<1x32xf32>
    %428 = arith.addf %409, %425 : vector<16x32xf32>
    %cst_124 = arith.constant dense<0.000000e+00> : vector<16xf32>
    %429 = vector.multi_reduction <add>, %428, %cst_124 [1] : vector<16x32xf32> to vector<16xf32>
    %430 = vector.shape_cast %429 : vector<16xf32> to vector<16x1xf32>
    %cst_125 = arith.constant 3.200000e+01 : f32
    %431 = vector.broadcast %cst_125 : f32 to vector<16x1xf32>
    %432 = arith.divf %430, %431 : vector<16x1xf32>
    %433 = vector.broadcast %432 : vector<16x1xf32> to vector<16x32xf32>
    %434 = arith.subf %428, %433 : vector<16x32xf32>
    %435 = arith.mulf %434, %434 : vector<16x32xf32>
    %cst_126 = arith.constant dense<0.000000e+00> : vector<16xf32>
    %436 = vector.multi_reduction <add>, %435, %cst_126 [1] : vector<16x32xf32> to vector<16xf32>
    %437 = vector.shape_cast %436 : vector<16xf32> to vector<16x1xf32>
    %cst_127 = arith.constant 3.200000e+01 : f32
    %438 = vector.broadcast %cst_127 : f32 to vector<16x1xf32>
    %439 = arith.divf %437, %438 : vector<16x1xf32>
    %440 = vector.broadcast %432 : vector<16x1xf32> to vector<16x32xf32>
    %441 = arith.subf %428, %440 : vector<16x32xf32>
    %cst_128 = arith.constant 9.99999997E-7 : f32
    %442 = vector.broadcast %cst_128 : f32 to vector<16x1xf32>
    %443 = arith.addf %439, %442 : vector<16x1xf32>
    %444 = math.rsqrt %443 : vector<16x1xf32>
    %445 = vector.broadcast %444 : vector<16x1xf32> to vector<16x32xf32>
    %446 = arith.mulf %441, %445 : vector<16x32xf32>
    %447 = vector.broadcast %426 : vector<1x32xf32> to vector<16x32xf32>
    %448 = arith.mulf %446, %447 : vector<16x32xf32>
    %449 = vector.broadcast %427 : vector<1x32xf32> to vector<16x32xf32>
    %450 = arith.addf %448, %449 : vector<16x32xf32>
    %451 = arith.truncf %450 : vector<16x32xf32> to vector<16x32xbf16>
    %c0_129 = arith.constant 0 : index
    %c0_130 = arith.constant 0 : index
    %452 = vector.load %arg12[%c0_129, %c0_130] : memref<32x128xbf16, #tpu.memory_space<vmem>>, vector<32x128xbf16>
    %cst_131 = arith.constant dense<0.000000e+00> : vector<16x128xf32>
    %453 = tpu.matmul %451, %452, %cst_131 {dimension_numbers = #tpu.dot_dimension_numbers<[1], [0], [0], [1], [0, 0, 1, 1], [], []>} : vector<16x32xbf16>, vector<32x128xbf16>, vector<16x128xf32> -> vector<16x128xf32>
    %c0_132 = arith.constant 0 : index
    %c0_133 = arith.constant 0 : index
    %454 = vector.load %arg13[%c0_132, %c0_133] : memref<16x128xf32, #tpu.memory_space<vmem>>, vector<16x128xf32>
    tpu.vector_store %arg13[%c0_132, %c0_133], %453 {strides = array<i32>} : memref<16x128xf32, #tpu.memory_space<vmem>>, vector<16x128xf32>,
    return
  }
}

</mosaic_0001>

<bundles_post_ra>
// kernel: eq.25
= control target key start
LH: loop header
LB: loop body
LE: loop exit
PB: predicated region body
PF: predicated region fallthrough
CT: control target
= control target key end

     0   :  { %vm8_vm0 = vcmask 130048   ;;  %vm14_vm1 = vcmask 261248   ;;  %s42_s0 = inlined_call_operand.vmem [shape: s32[2,16], index: 0, kind: input, shape index: {}]   ;;  %s43_s1 = inlined_call_operand.vmem [shape: s32[32], index: 1, kind: output, shape index: {}]  }
   0x1   :  { %v5_v0 = vld [vmem:[%s42_s0] sm:$0x3]  ;;  %s25_s0 = smov 16  }
   0x2   :  { %6 = vst [vmem:[#allocation1] sm:$0x3] %v5_v0 }
   0x9   :  { %v11_v1 = vld [vmem:[#allocation1 + $0x1] sm:$0x1]   ;;  %v7_v2 = vld [vmem:[#allocation1] sm:$0x1]  }
   0xa   :  { %12 = vrot.lane.b32.xlu0 %v11_v1, %s25_s0  ;;  %9 = vst.msk [vmem:[#allocation0] sm:$0x1] %vm8_vm0, %v7_v2  }
  0x7c   :  { %v13_v3 = vpop.permute.xlu0 %12  }
  0x7d   :  { %15 = vst.msk [vmem:[#allocation0] sm:$0x1] %vm14_vm1, %v13_v3  }
  0x84   :  { %v20_v4 = vld [vmem:[#allocation0] sm:$0x1] }
  0x85   :  { %23 = vst [vmem:[%s43_s1] sm:$0x1] %v20_v4 }

// kernel: eq.15
= control target key start
LH: loop header
LB: loop body
LE: loop exit
PB: predicated region body
PF: predicated region fallthrough
CT: control target
= control target key end

     0   :  { %vm8_vm0 = vcmask 64512   ;;  %vm14_vm1 = vcmask 130112   ;;  %s42_s0 = inlined_call_operand.vmem [shape: s32[2,8], index: 0, kind: input, shape index: {}]   ;;  %s43_s1 = inlined_call_operand.vmem [shape: s32[16], index: 1, kind: output, shape index: {}]  }
   0x1   :  { %v5_v0 = vld [vmem:[%s42_s0] sm:$0x3]  ;;  %s25_s0 = smov 8  }
   0x2   :  { %6 = vst [vmem:[#allocation1] sm:$0x3] %v5_v0 }
   0x9   :  { %v11_v1 = vld [vmem:[#allocation1 + $0x1] sm:$0x1]   ;;  %v7_v2 = vld [vmem:[#allocation1] sm:$0x1]  }
   0xa   :  { %12 = vrot.lane.b32.xlu0 %v11_v1, %s25_s0  ;;  %9 = vst.msk [vmem:[#allocation0] sm:$0x1] %vm8_vm0, %v7_v2  }
  0x7c   :  { %v13_v3 = vpop.permute.xlu0 %12  }
  0x7d   :  { %15 = vst.msk [vmem:[#allocation0] sm:$0x1] %vm14_vm1, %v13_v3  }
  0x84   :  { %v20_v4 = vld [vmem:[#allocation0] sm:$0x1] }
  0x85   :  { %23 = vst [vmem:[%s43_s1] sm:$0x1] %v20_v4 }

// kernel: decoder_forward.1
= control target key start
LH: loop header
LB: loop body
LE: loop exit
PB: predicated region body
PF: predicated region fallthrough
CT: control target
= control target key end

     0   :  { %v3298_v0 = vmov 0   ;;  %v3299_v2 = vmov 0.0   ;;  %vm3300_vm0 = vmmov 0   ;;  %v50_v8 = vlaneseq  ;;  %s3301_s28 = smov 32   ;;  %s3303_s15 = smov 120   ;;  %s4084_s0 = inlined_call_operand.vmem [shape: s32[16,1], index: 0, kind: input, shape index: {}]   ;;  %s4085_s5 = inlined_call_operand.vmem [shape: bf16[64,32], index: 5, kind: input, shape index: {}]   ;;  %s4086_s7 = inlined_call_operand.vmem [shape: bf16[32,192], index: 7, kind: input, shape index: {}]   ;;  %s4087_s6 = inlined_call_operand.vmem [shape: f32[19,32], index: 6, kind: input, shape index: {}]   ;;  %s4088_s1 = inlined_call_operand.vmem [shape: f32[16,32], index: 1, kind: input, shape index: {}]   ;;  %s4089_s3 = inlined_call_operand.vmem [shape: f32[16,16], index: 3, kind: input, shape index: {}]   ;;  %s4090_s9 = inlined_call_operand.vmem [shape: bf16[2,32,160], index: 9, kind: input, shape index: {}]   ;;  %s4091_s2 = inlined_call_operand.vmem [shape: bf16[32,32], index: 2, kind: input, shape index: {}]   ;;  %s4092_s8 = inlined_call_operand.vmem [shape: bf16[2,32,32], index: 8, kind: input, shape index: {}]   ;;  %s4093_s4 = inlined_call_operand.vmem [shape: f32[16,32], index: 4, kind: input, shape index: {}]   ;;  %s4094_s10 = inlined_call_operand.vmem [shape: bf16[2,32,64], index: 10, kind: input, shape index: {}]   ;;  %s4095_s11 = inlined_call_operand.vmem [shape: bf16[2,64,32], index: 11, kind: input, shape index: {}]   ;;  %s4096_s12 = inlined_call_operand.vmem [shape: bf16[32,128], index: 12, kind: input, shape index: {}]   ;;  %s4097_s13 = inlined_call_operand.vmem [shape: f32[16,128], index: 13, kind: output, shape index: {}]  }
   0x1   :  { %3128 = vset.pattern.permute.xlu0 %v3298_v0  ;;  %v48_v1 = vld [vmem:[%s4084_s0] sm:$0xff]  ;;  %2864 = vmatprep.subr.bf16.mxu0 %v3299_v2  ;;  %v3129_v3 = vld [vmem:[%s4085_s5 + $0x18] sm:$0xff]   ;;  %v49_v4 = vld [vmem:[%s4084_s0 + $0x8] sm:$0xff]  ;;  %vm99_vm3 = vcmask 523264   ;;  %vm177_vm4 = vcmask 261120   ;;  %vm247_vm5 = vcmask 64512  }
   0x2   :  { %53 = vperm.xlu0 %3128, %v48_v1   ;;  %213 = vmatprep.mubr.bf16.mxu1 %v3298_v0  ;;  %v3130_v5 = vld [vmem:[%s4085_s5 + $0x10] sm:$0xff]   ;;  %v3131_v6 = vld [vmem:[%s4085_s5 + $0x8] sm:$0xff]   ;;  %v3132_v7 = vld [vmem:[%s4085_s5] sm:$0xff]   ;;  %v51_v9 = vand.u32 127, %v50_v8  ;;  %v3424_v19 = vshrl.u32 %v50_v8, 7  ;;  %vm295_vm6 = vcmask 130048  }
   0x3   :  { %2865 = vmatpush3.bf16.msra.mxu0 %v3129_v3  ;;  %2872 = vmatprep.mubr.msk.bf16.mxu0 %vm3300_vm0, %v3299_v2  ;;  %v3133_v15 = vld [vmem:[%s4086_s7 + $0x14] ss:$8 sps:$4 sm:$0xff]   ;;  %v3135_v16 = vld [vmem:[%s4086_s7 + $0x10] ss:$8 sps:$4 sm:$0xff]   ;;  %v3136_v17 = vld [vmem:[%s4086_s7 + $0x4] ss:$8 sps:$4 sm:$0xff]  }
   0x4   :  { %2866 = vmatprep.subr.bf16.mxu0 %v3299_v2  ;;  %193 = vmatprep.subr.bf16.mxu1 %v3133_v15  ;;  %v3138_v18 = vld [vmem:[%s4086_s7] ss:$8 sps:$4 sm:$0xff]   ;;  %v3428_v20 = vsub.s32 1, %v3424_v19  ;;  %v3454_v32 = vsub.s32 0, %v3424_v19  ;;  %s3305_s5 = smov 96   ;;  %s3306_s19 = smov 72  }
   0x5   :  { %194 = vmatpush1.bf16.msra.mxu1 %v3135_v16  ;;  %v3433_v21 = vld [vmem:[%s4087_s6] sm:$0xff]  ;;  %v74_v26 = vld [vmem:[%s4088_s1 + $0x8] sm:$0xff]  ;;  %s3307_s20 = smov 112   ;;  %s3308_s21 = smov 104  }
   0x6   :  { %56 = vperm.xlu0 %3128, %v49_v4   ;;  %195 = vmatprep.subr.bf16.mxu1 %v3136_v17  ;;  %v233_v22 = vrot.slane %v3433_v21, %v3428_v20  ;;  %v73_v24 = vld [vmem:[%s4088_s1] sm:$0xff]  ;;  %v227_v34 = vrot.slane %v3433_v21, %v3454_v32  ;;  %s3302_s1 = smov 88   ;;  %v3477_v52 = vld [vmem:[%s4089_s3 + $0x8] sm:$0xff]  ;;  %s3309_s22 = smov 64  }
   0x7   :  { %2867 = vmatpush3.bf16.msra.mxu0 %v3130_v5  ;;  %v3471_v48 = vld [vmem:[%s4089_s3] sm:$0xff]  ;;  %s3304_s3 = smov 80  }
   0x8   :  { %2868 = vmatprep.subr.bf16.mxu0 %v3299_v2  ;;  %235 = vrot.lane.b32.xlu1 %v233_v22, %s3301_s28 }
   0x9   :  { %196 = vmatpush1.bf16.msra.mxu1 %v3138_v18 }
   0xa   :  { %2876 = vmatprep.subr.bf16.mxu1 %v3299_v2 }
   0xb   :  { %2869 = vmatpush3.bf16.msra.mxu0 %v3131_v6 }
   0xc   :  { %2870 = vmatprep.subr.bf16.mxu0 %v3299_v2 }
   0xf   :  { %2871 = vmatpush3.bf16.msra.mxu0 %v3132_v7 }
  0x10   :  { %2882 = vmatprep.subr.bf16.mxu0 %v3299_v2 }
  0x7a   :  { %v236_v35 = vpop.permute.xlu1 %235 }
  0x7d   :  { %v54_v10 = vpop.permute.xlu0 %53 }
  0x7e   :  { %vm58_vm1 = vcmp.eq.s32.totalorder %v51_v9, %v54_v10 }
  0x7f   :  { %v2675_v12 = vsel %vm58_vm1, 1.0, %v3299_v2 }
  0x81   :  { %v57_v11 = vpop.permute.xlu0 %56 }
  0x82   :  { %vm59_vm2 = vcmp.eq.s32.totalorder %v51_v9, %v57_v11 }
  0x83   :  { %v2676_v13 = vsel %vm59_vm2, 1.0, %v3299_v2 }
  0x84   :  { %v64_v14 = vpack.c.bf16 %v2676_v13, %v2675_v12 }
  0x86   :  { %2873 = vmatmul.mubr.msk.bf16.vlgmr.msra.gmra.mxu0 %vm99_vm3, %v64_v14 }
  0x87   :  { %2884 = vmatprep.mubr.msk.bf16.mxu0 %vm3300_vm0, %v3299_v2 }
 0x146   :  { %v137_v23 = vpop.f32.mrf.mxu0 }
 0x147   :  { %v3444_v28 = vadd.f32 %v137_v23, %v73_v24 }
 0x148   :  { %v2874_v25 = vpop.f32.mrf.mxu0 }
 0x14a   :  { %v140_v27 = vpop.f32.mrf.mxu0 }
 0x14b   :  { %v3446_v29 = vadd.f32 %v140_v27, %v74_v26 }
 0x14c   :  { %v2875_v30 = vpop.f32.mrf.mxu0 }
 0x14d   :  { %v152_v31 = vpack.c.bf16 %v3446_v29, %v3444_v28 }
 0x14f   :  { %2686 = vmatmul.mubr.msk.bf16.vlgmr.msra.gmra.mxu1 %vm177_vm4, %v152_v31 }
 0x150   :  { %2878 = vmatprep.mubr.msk.bf16.mxu1 %vm3300_vm0, %v3299_v2 }
 0x20f   :  { %v215_v33 = vpop.f32.mrf.mxu1 }
 0x210   :  { %v228_v37 = vadd.f32 %v227_v34, %v215_v33  ;;  %v238_v39 = vadd.f32 %v236_v35, %v215_v33 }
 0x211   :  { %v3458_v36 = vpop.f32.mrf.mxu1 }
 0x213   :  { %v219_v38 = vpop.f32.mrf.mxu1 }
 0x214   :  { %v229_v40 = vadd.f32 %v227_v34, %v219_v38  ;;  %v239_v41 = vadd.f32 %v236_v35, %v219_v38  ;;  %v3460_v42 = vpack.c.bf16 %v219_v38, %v215_v33 }
 0x215   :  { %v3508_v25 = vpop.f32.mrf.mxu1 }
 0x216   :  { %v240_v43 = vpack.c.bf16 %v229_v40, %v228_v37  ;;  %v241_v44 = vpack.c.bf16 %v239_v41, %v238_v39 }
 0x218   :  { %322 = vrot.lane.b32.xlu1 %v241_v44, %s3302_s1  ;;  %320 = vrot.lane.b32.xlu0 %v240_v43, %s3303_s15 }
 0x28a   :  { %v323_v45 = vpop.permute.xlu1 %322  ;;  %v321_v47 = vpop.permute.xlu0 %320 }
 0x28b   :  { %v328_v46 = vsel %vm247_vm5, %v323_v45, 0 }
 0x28c   :  { %2883 = vmatpush3.bf16.xpose.msra.mxu0 %v328_v46 }
 0x28d   :  { %2894 = vmatprep.subr.bf16.mxu0 %v3299_v2 }
 0x293   :  { %2885 = vmatmul.mubr.msk.bf16.vlgmr.msra.gmra.mxu0 %vm247_vm5, %v321_v47 }
 0x294   :  { %2896 = vmatprep.mubr.msk.bf16.mxu0 %vm3300_vm0, %v3299_v2 }
 0x353   :  { %v364_v49 = vpop.f32.mrf.mxu0 }
 0x354   :  { %v365_v50 = vadd.f32 %v364_v49, %v3471_v48 }
 0x355   :  { %v2886_v51 = vpop.f32.mrf.mxu0 }
 0x356   :  { %v371_v53 = vsel %vm295_vm6, %v365_v50, -inf }
 0x357   :  { %372 = vmax.xlane.f32.xlu1 %v371_v53  ;;  %v367_v54 = vpop.f32.mrf.mxu0 }
 0x358   :  { %v368_v55 = vadd.f32 %v367_v54, %v3477_v52 }
 0x359   :  { %v2887_v56 = vpop.f32.mrf.mxu0 }
 0x35a   :  { %v374_v57 = vsel %vm295_vm6, %v368_v55, -inf }
 0x35b   :  { %375 = vmax.xlane.f32.xlu0 %v374_v57 }
 0x368   :  { %395 = vrot.lane.b32.xlu1 %v3460_v42, %s3301_s28 }
 0x3e0   :  { %v373_v58 = vpop.xlane.xlu1 %372 }
 0x3e1   :  { %v377_v59 = vsub.f32 %v365_v50, %v373_v58 }
 0x3e3   :  { %v379_v60 = vmul.f32 1.442695, %v377_v59 }
 0x3e4   :  { %v376_v61 = vpop.xlane.xlu0 %375  ;;  %v396_v6 = vpop.permute.xlu1 %395 }
 0x3e5   :  { %3171 = vpow2.f32 %v379_v60  ;;  %v378_v62 = vsub.f32 %v368_v55, %v376_v61 }
 0x3e7   :  { %v381_v63 = vmul.f32 1.442695, %v378_v62 }
 0x3e9   :  { %3173 = vpow2.f32 %v381_v63 }
 0x3f2   :  { %v3172_v1 = vpop.eup %3171 }
 0x3f3   :  { %v383_v3 = vsel %vm295_vm6, %v3172_v1, 0.0 }
 0x3f4   :  { %384 = vadd.xlane.f32.xlu0 %v383_v3 }
 0x3f6   :  { %v3174_v4 = vpop.eup %3173 }
 0x3f7   :  { %v386_v5 = vsel %vm295_vm6, %v3174_v4, 0.0 }
 0x3f8   :  { %387 = vadd.xlane.f32.xlu1 %v386_v5 }
 0x409   :  { %491 = vrot.lane.b32.xlu1 %v241_v44, %s3304_s3 }
 0x40a   :  { %245 = vrot.lane.b32.xlu0 %v241_v44, %s3305_s5 }
 0x40d   :  { %611 = vrot.lane.b32.xlu1 %v241_v44, %s3306_s19 }
 0x40e   :  { %489 = vrot.lane.b32.xlu0 %v240_v43, %s3307_s20 }
 0x412   :  { %609 = vrot.lane.b32.xlu0 %v240_v43, %s3308_s21 }
 0x47d   :  { %v385_v7 = vpop.xlane.xlu0 %384 }
 0x47e   :  { %3175 = vrcp.f32 %v385_v7 }
 0x481   :  { %v388_v8 = vpop.xlane.xlu1 %387  ;;  %v246_v9 = vpop.permute.xlu0 %245 }
 0x482   :  { %3177 = vrcp.f32 %v388_v8  ;;  %v252_v10 = vsel %vm247_vm5, %v246_v9, 0 }
 0x483   :  { %2877 = vmatpush3.bf16.xpose.msra.mxu1 %v252_v10 }
 0x484   :  { %2888 = vmatprep.subr.bf16.mxu1 %v3299_v2 }
 0x485   :  { %v492_v15 = vpop.permute.xlu1 %491  ;;  %v490_v22 = vpop.permute.xlu0 %489 }
 0x486   :  { %v497_v17 = vsel %vm247_vm5, %v492_v15, 0 }
 0x489   :  { %v612_v18 = vpop.permute.xlu1 %611  ;;  %v610_v24 = vpop.permute.xlu0 %609 }
 0x48a   :  { %2879 = vmatmul.mubr.msk.bf16.vlgmr.msra.gmra.mxu1 %vm247_vm5, %v240_v43  ;;  %v617_v23 = vsel %vm247_vm5, %v612_v18, 0 }
 0x48b   :  { %2889 = vmatpush3.bf16.msra.mxu1 %v396_v6  ;;  %2890 = vmatprep.mubr.msk.bf16.mxu1 %vm3300_vm0, %v3299_v2  ;;  %v3176_v11 = vpop.eup %3175 }
 0x48c   :  { %2900 = vmatprep.subr.bf16.mxu1 %v3299_v2  ;;  %v391_v13 = vmul.f32 %v3176_v11, %v3172_v1 }
 0x48f   :  { %v3178_v12 = vpop.eup %3177 }
 0x490   :  { %v392_v14 = vmul.f32 %v3178_v12, %v3174_v4 }
 0x492   :  { %v393_v16 = vpack.c.bf16 %v392_v14, %v391_v13 }
 0x494   :  { %2891 = vmatmul.mubr.msk.bf16.vlgmr.msra.gmra.mxu1 %vm295_vm6, %v393_v16 }
 0x495   :  { %2901 = vmatpush3.bf16.xpose.msra.mxu1 %v497_v17  ;;  %2902 = vmatprep.mubr.msk.bf16.mxu1 %vm3300_vm0, %v3299_v2 }
 0x496   :  { %2912 = vmatprep.subr.bf16.mxu1 %v3299_v2 }
 0x49c   :  { %2903 = vmatmul.mubr.msk.bf16.vlgmr.msra.gmra.mxu1 %vm247_vm5, %v490_v22 }
 0x49d   :  { %2913 = vmatpush3.bf16.xpose.msra.mxu1 %v617_v23  ;;  %2914 = vmatprep.mubr.msk.bf16.mxu1 %vm3300_vm0, %v3299_v2 }
 0x49e   :  { %2924 = vmatprep.subr.bf16.mxu1 %v3299_v2 }
 0x4a4   :  { %2915 = vmatmul.mubr.msk.bf16.vlgmr.msra.gmra.mxu1 %vm247_vm5, %v610_v24 }
 0x4a5   :  { %2928 = vmatprep.mubr.msk.bf16.mxu1 %vm3300_vm0, %v3299_v2 }
 0x54a   :  { %v288_v26 = vpop.f32.mrf.mxu1 }
 0x54b   :  { %v289_v27 = vadd.f32 %v288_v26, %v3471_v48 }
 0x54c   :  { %v2880_v30 = vpop.f32.mrf.mxu1 }
 0x54d   :  { %v296_v31 = vsel %vm295_vm6, %v289_v27, -inf }
 0x54e   :  { %297 = vmax.xlane.f32.xlu1 %v296_v31  ;;  %v291_v33 = vpop.f32.mrf.mxu1 }
 0x54f   :  { %v292_v34 = vadd.f32 %v291_v33, %v3477_v52 }
 0x550   :  { %v2881_v35 = vpop.f32.mrf.mxu1 }
 0x551   :  { %v299_v37 = vsel %vm295_vm6, %v292_v34, -inf }
 0x552   :  { %300 = vmax.xlane.f32.xlu0 %v299_v37 }
 0x554   :  { %v3514_v38 = vpop.f32.mrf.mxu1 }
 0x556   :  { %v2892_v39 = vpop.f32.mrf.mxu1 }
 0x558   :  { %v3516_v40 = vpop.f32.mrf.mxu1 }
 0x55a   :  { %v2893_v41 = vpop.f32.mrf.mxu1 }
 0x55c   :  { %v533_v43 = vpop.f32.mrf.mxu1 }
 0x55d   :  { %v534_v44 = vadd.f32 %v533_v43, %v3471_v48 }
 0x55e   :  { %v2904_v45 = vpop.f32.mrf.mxu1 }
 0x55f   :  { %v540_v46 = vsel %vm295_vm6, %v534_v44, -inf }
 0x560   :  { %541 = vmax.xlane.f32.xlu0 %v540_v46  ;;  %v536_v47 = vpop.f32.mrf.mxu1 }
 0x561   :  { %v537_v49 = vadd.f32 %v536_v47, %v3477_v52 }
 0x562   :  { %v2905_v50 = vpop.f32.mrf.mxu1 }
 0x563   :  { %v543_v51 = vsel %vm295_vm6, %v537_v49, -inf }
 0x564   :  { %544 = vmax.xlane.f32.xlu1 %v543_v51  ;;  %v653_v53 = vpop.f32.mrf.mxu1 }
 0x565   :  { %v654_v54 = vadd.f32 %v653_v53, %v3471_v48 }
 0x566   :  { %v2916_v55 = vpop.f32.mrf.mxu1 }
 0x567   :  { %v660_v56 = vsel %vm295_vm6, %v654_v54, -inf }
 0x568   :  { %661 = vmax.xlane.f32.xlu0 %v660_v56  ;;  %v656_v57 = vpop.f32.mrf.mxu1 }
 0x569   :  { %v657_v58 = vadd.f32 %v656_v57, %v3477_v52 }
 0x56a   :  { %v2917_v59 = vpop.f32.mrf.mxu1 }
 0x56b   :  { %v663_v60 = vsel %vm295_vm6, %v657_v58, -inf }
 0x56c   :  { %664 = vmax.xlane.f32.xlu1 %v663_v60 }
 0x5d7   :  { %v298_v61 = vpop.xlane.xlu1 %297 }
 0x5d8   :  { %v302_v62 = vsub.f32 %v289_v27, %v298_v61 }
 0x5da   :  { %v304_v63 = vmul.f32 1.442695, %v302_v62 }
 0x5db   :  { %v301_v1 = vpop.xlane.xlu0 %300 }
 0x5dc   :  { %3179 = vpow2.f32 %v304_v63  ;;  %v303_v3 = vsub.f32 %v292_v34, %v301_v1  ;;  %v243_v34 = vpack.c.bf16 %v3508_v25, %v3458_v36 }
 0x5de   :  { %v306_v4 = vmul.f32 1.442695, %v303_v3 }
 0x5e0   :  { %3181 = vpow2.f32 %v306_v4 }
 0x5e9   :  { %v3180_v48 = vpop.eup %3179  ;;  %v542_v5 = vpop.xlane.xlu0 %541 }
 0x5ea   :  { %v546_v6 = vsub.f32 %v534_v44, %v542_v5  ;;  %v308_v7 = vsel %vm295_vm6, %v3180_v48, 0.0 }
 0x5eb   :  { %309 = vadd.xlane.f32.xlu0 %v308_v7 }
 0x5ec   :  { %v548_v8 = vmul.f32 1.442695, %v546_v6 }
 0x5ed   :  { %v3182_v52 = vpop.eup %3181  ;;  %v545_v9 = vpop.xlane.xlu1 %544 }
 0x5ee   :  { %3183 = vpow2.f32 %v548_v8  ;;  %v547_v10 = vsub.f32 %v537_v49, %v545_v9  ;;  %v311_v11 = vsel %vm295_vm6, %v3182_v52, 0.0 }
 0x5ef   :  { %312 = vadd.xlane.f32.xlu1 %v311_v11 }
 0x5f0   :  { %v550_v12 = vmul.f32 1.442695, %v547_v10 }
 0x5f1   :  { %v662_v13 = vpop.xlane.xlu0 %661 }
 0x5f2   :  { %3185 = vpow2.f32 %v550_v12  ;;  %v666_v14 = vsub.f32 %v654_v54, %v662_v13 }
 0x5f4   :  { %v668_v15 = vmul.f32 1.442695, %v666_v14 }
 0x5f5   :  { %v665_v16 = vpop.xlane.xlu1 %664 }
 0x5f6   :  { %3187 = vpow2.f32 %v668_v15  ;;  %v667_v17 = vsub.f32 %v657_v58, %v665_v16 }
 0x5f8   :  { %v670_v18 = vmul.f32 1.442695, %v667_v17 }
 0x5fa   :  { %3189 = vpow2.f32 %v670_v18 }
 0x5fb   :  { %v3184_v22 = vpop.eup %3183 }
 0x5fc   :  { %v552_v23 = vsel %vm295_vm6, %v3184_v22, 0.0 }
 0x5fd   :  { %553 = vadd.xlane.f32.xlu0 %v552_v23 }
 0x5ff   :  { %v3186_v24 = vpop.eup %3185 }
 0x600   :  { %v555_v26 = vsel %vm295_vm6, %v3186_v24, 0.0 }
 0x601   :  { %556 = vadd.xlane.f32.xlu1 %v555_v26  ;;  %v3141_v26 = vld [vmem:[%s4090_s9 + $0x14] ss:$8 sps:$4 sm:$0xff]  }
 0x603   :  { %v3188_v27 = vpop.eup %3187 }
 0x604   :  { %v672_v30 = vsel %vm295_vm6, %v3188_v27, 0.0 }
 0x605   :  { %673 = vadd.xlane.f32.xlu0 %v672_v30  ;;  %v3582_v30 = vld [vmem:[%s4091_s2 + $0x8] sm:$0xff]  }
 0x607   :  { %v3190_v31 = vpop.eup %3189 }
 0x608   :  { %v675_v33 = vsel %vm295_vm6, %v3190_v31, 0.0 }
 0x609   :  { %676 = vadd.xlane.f32.xlu1 %v675_v33 }
 0x61a   :  { %684 = vrot.lane.b32.xlu1 %v243_v34, %s3305_s5 }
 0x61b   :  { %442 = vrot.lane.b32.xlu0 %v3460_v42, %s3309_s22 }
 0x674   :  { %v310_v37 = vpop.xlane.xlu0 %309 }
 0x678   :  { %v313_v35 = vpop.xlane.xlu1 %312 }
 0x679   :  { %3191 = vrcp.f32 %v313_v35 }
 0x67a   :  { %3193 = vrcp.f32 %v310_v37 }
 0x686   :  { %v554_v39 = vpop.xlane.xlu0 %553  ;;  %v3192_v43 = vpop.eup %3191 }
 0x687   :  { %3195 = vrcp.f32 %v554_v39  ;;  %v3194_v45 = vpop.eup %3193  ;;  %v317_v46 = vmul.f32 %v3192_v43, %v3182_v52 }
 0x688   :  { %v316_v47 = vmul.f32 %v3194_v45, %v3180_v48  ;;  %v3548_v48 = vsub.s32 2, %v3424_v19 }
 0x68a   :  { %v557_v41 = vpop.xlane.xlu1 %556  ;;  %v318_v49 = vpack.c.bf16 %v317_v46, %v316_v47  ;;  %v736_v52 = vrot.slane %v3433_v21, %v3548_v48  ;;  %v3147_v46 = vld [vmem:[%s4092_s8 + $0x8] sm:$0xff]  }
 0x68b   :  { %3197 = vrcp.f32 %v557_v41  ;;  %2925 = vmatpush3.bf16.msra.mxu1 %v3147_v46 }
 0x68c   :  { %2926 = vmatprep.subr.bf16.mxu1 %v3299_v2 }
 0x68e   :  { %v674_v44 = vpop.xlane.xlu0 %673 }
 0x68f   :  { %3199 = vrcp.f32 %v674_v44 }
 0x692   :  { %v677_v36 = vpop.xlane.xlu1 %676  ;;  %v443_v25 = vpop.permute.xlu0 %442 }
 0x693   :  { %3201 = vrcp.f32 %v677_v36  ;;  %2895 = vmatpush3.bf16.msra.mxu0 %v443_v25  ;;  %v3148_v36 = vld [vmem:[%s4092_s8] sm:$0xff]   ;;  %v940_v25 = vsub.s32 6, %v3424_v19 }
 0x694   :  { %2906 = vmatprep.subr.bf16.mxu0 %v3299_v2  ;;  %v3196_v42 = vpop.eup %3195  ;;  %2927 = vmatpush3.bf16.msra.mxu1 %v3148_v36 }
 0x695   :  { %v560_v51 = vmul.f32 %v3196_v42, %v3184_v22  ;;  %2932 = vmatprep.subr.bf16.mxu1 %v3299_v2 }
 0x696   :  { %2897 = vmatmul.mubr.msk.bf16.vlgmr.msra.gmra.mxu0 %vm295_vm6, %v318_v49  ;;  %v685_v56 = vpop.permute.xlu1 %684  ;;  %v941_v49 = vrot.slane %v3433_v21, %v940_v25 }
 0x697   :  { %2907 = vmatpush3.bf16.msra.mxu0 %v243_v34  ;;  %2908 = vmatprep.mubr.msk.bf16.mxu0 %vm3300_vm0, %v3299_v2 }
 0x698   :  { %v3198_v50 = vpop.eup %3197  ;;  %2918 = vmatprep.subr.bf16.mxu0 %v3299_v2 }
 0x699   :  { %v561_v53 = vmul.f32 %v3198_v50, %v3186_v24 }
 0x69b   :  { %v562_v54 = vpack.c.bf16 %v561_v53, %v560_v51 }
 0x69c   :  { %v3200_v55 = vpop.eup %3199 }
 0x69d   :  { %v680_v58 = vmul.f32 %v3200_v55, %v3188_v27  ;;  %v3573_v27 = vld [vmem:[%s4091_s2] sm:$0xff]  }
 0x69e   :  { %2909 = vmatmul.mubr.msk.bf16.vlgmr.msra.gmra.mxu0 %vm295_vm6, %v562_v54 }
 0x69f   :  { %2919 = vmatpush3.bf16.msra.mxu0 %v685_v56  ;;  %2920 = vmatprep.mubr.msk.bf16.mxu0 %vm3300_vm0, %v3299_v2 }
 0x6a0   :  { %v3202_v57 = vpop.eup %3201  ;;  %897 = vmatprep.subr.bf16.mxu0 %v3141_v26 }
 0x6a1   :  { %v681_v59 = vmul.f32 %v3202_v57, %v3190_v31 }
 0x6a3   :  { %v682_v60 = vpack.c.bf16 %v681_v59, %v680_v58 }
 0x6a6   :  { %2921 = vmatmul.mubr.msk.bf16.vlgmr.msra.gmra.mxu0 %vm295_vm6, %v682_v60 }
 0x6a7   :  { %917 = vmatprep.mubr.bf16.mxu0 %v3298_v0 }
 0x756   :  { %v482_v61 = vpop.f32.mrf.mxu0 }
 0x757   :  { %v483_v6 = vadd.f32 %v482_v61, %v3514_v38 }
 0x758   :  { %v2898_v62 = vpop.f32.mrf.mxu0 }
 0x75a   :  { %v485_v63 = vpop.f32.mrf.mxu0 }
 0x75b   :  { %v486_v10 = vadd.f32 %v485_v63, %v3516_v40  ;;  %v3139_v40 = vld [vmem:[%s4090_s9 + $0x10] ss:$8 sps:$4 sm:$0xff]  }
 0x75c   :  { %v2899_v1 = vpop.f32.mrf.mxu0  ;;  %898 = vmatpush1.bf16.msra.mxu0 %v3139_v40 }
 0x75e   :  { %v600_v3 = vpop.f32.mrf.mxu0 }
 0x75f   :  { %v607_v8 = vadd.f32 %v600_v3, %v483_v6 }
 0x760   :  { %v2910_v4 = vpop.f32.mrf.mxu0 }
 0x762   :  { %v603_v5 = vpop.f32.mrf.mxu0 }
 0x763   :  { %v608_v13 = vadd.f32 %v603_v5, %v486_v10 }
 0x764   :  { %v2911_v7 = vpop.f32.mrf.mxu0 }
 0x766   :  { %v724_v9 = vpop.f32.mrf.mxu0 }
 0x767   :  { %v731_v11 = vadd.f32 %v724_v9, %v607_v8 }
 0x768   :  { %v2922_v12 = vpop.f32.mrf.mxu0 }
 0x769   :  { %v737_v14 = vadd.f32 %v736_v52, %v731_v11  ;;  %v776_v12 = vsub.s32 4, %v3424_v19 }
 0x76a   :  { %v727_v15 = vpop.f32.mrf.mxu0 }
 0x76b   :  { %v732_v16 = vadd.f32 %v727_v15, %v608_v13  ;;  %v739_v17 = vadd.f32 %v737_v14, %v3444_v28  ;;  %v3144_v28 = vld [vmem:[%s4090_s9 + $0x4] ss:$8 sps:$4 sm:$0xff]  }
 0x76c   :  { %v2923_v18 = vpop.f32.mrf.mxu0  ;;  %899 = vmatprep.subr.bf16.mxu0 %v3144_v28 }
 0x76d   :  { %v738_v22 = vadd.f32 %v736_v52, %v732_v16  ;;  %v741_v38 = vsel %vm177_vm4, %v739_v17, 0.0  ;;  %v770_v52 = vsub.s32 3, %v3424_v19  ;;  %v777_v16 = vrot.slane %v3433_v21, %v776_v12 }
 0x76e   :  { %742 = vadd.xlane.f32.xlu1 %v741_v38 }
 0x76f   :  { %v740_v23 = vadd.f32 %v738_v22, %v3446_v29  ;;  %v3142_v29 = vld [vmem:[%s4090_s9] ss:$8 sps:$4 sm:$0xff]   ;;  %v771_v11 = vrot.slane %v3433_v21, %v770_v52 }
 0x770   :  { %900 = vmatpush1.bf16.msra.mxu0 %v3142_v29 }
 0x771   :  { %v744_v24 = vsel %vm177_vm4, %v740_v23, 0.0  ;;  %2940 = vmatprep.subr.bf16.mxu0 %v3299_v2 }
 0x772   :  { %745 = vadd.xlane.f32.xlu0 %v744_v24 }
 0x773   :  { %2704 = vmatmul.mubr.msk.bf16.vlgmr.msra.gmra.mxu0 %vm177_vm4, %v3573_v27 }
 0x774   :  { %927 = vmatprep.mubr.bf16.mxu0 %v3298_v0 }
 0x77b   :  { %2705 = vmatmul.mubr.msk.bf16.gmra.mxu0 %vm177_vm4, %v3582_v30 }
 0x77c   :  { %2944 = vmatprep.mubr.msk.bf16.mxu0 %vm3300_vm0, %v3299_v2 }
 0x7f7   :  { %v743_v31 = vpop.xlane.xlu1 %742 }
 0x7f8   :  { %v748_v33 = vmul.f32 0.03125, %v743_v31  ;;  %v787_v31 = vsub.s32 5, %v3424_v19 }
 0x7fa   :  { %v750_v34 = vsub.f32 %v739_v17, %v748_v33 }
 0x7fb   :  { %v746_v35 = vpop.xlane.xlu0 %745 }
 0x7fc   :  { %v749_v37 = vmul.f32 0.03125, %v746_v35  ;;  %v752_v39 = vmul.f32 %v750_v34, %v750_v34 }
 0x7fe   :  { %v751_v41 = vsub.f32 %v740_v23, %v749_v37  ;;  %v754_v43 = vsel %vm177_vm4, %v752_v39, 0.0 }
 0x7ff   :  { %755 = vadd.xlane.f32.xlu0 %v754_v43 }
 0x800   :  { %v753_v44 = vmul.f32 %v751_v41, %v751_v41 }
 0x802   :  { %v757_v45 = vsel %vm177_vm4, %v753_v44, 0.0 }
 0x803   :  { %758 = vadd.xlane.f32.xlu1 %v757_v45 }
 0x833   :  { %v919_v47 = vpop.f32.mrf.mxu0 }
 0x834   :  { %v942_v50 = vadd.f32 %v941_v49, %v919_v47 }
 0x835   :  { %v3602_v42 = vpop.f32.mrf.mxu0 }
 0x837   :  { %v923_v51 = vpop.f32.mrf.mxu0 }
 0x838   :  { %v943_v53 = vadd.f32 %v941_v49, %v923_v51  ;;  %v3604_v54 = vpack.c.bf16 %v923_v51, %v919_v47 }
 0x839   :  { %v3606_v55 = vpop.f32.mrf.mxu0 }
 0x83a   :  { %v3608_v56 = vpack.c.bf16 %v943_v53, %v942_v50  ;;  %v950_v57 = vpack.c.bf16 %v3606_v55, %v3602_v42  ;;  %v3669_v50 = vld [vmem:[%s4093_s4] sm:$0xff] }
 0x83b   :  { %v929_v58 = vpop.f32.mrf.mxu0 }
 0x83c   :  { %1031 = vrot.lane.b32.xlu1 %v3608_v56, %s3303_s15  ;;  %v944_v60 = vadd.f32 %v941_v49, %v929_v58  ;;  %v957_v24 = vsel %vm247_vm5, %v3608_v56, 0 }
 0x83d   :  { %v3614_v59 = vpop.f32.mrf.mxu0 }
 0x83f   :  { %v933_v61 = vpop.f32.mrf.mxu0 }
 0x840   :  { %v945_v62 = vadd.f32 %v941_v49, %v933_v61  ;;  %v3616_v63 = vpack.c.bf16 %v933_v61, %v929_v58  ;;  %v3676_v61 = vld [vmem:[%s4093_s4 + $0x8] sm:$0xff] }
 0x841   :  { %v3664_v49 = vpop.f32.mrf.mxu0 }
 0x842   :  { %v3618_v1 = vpack.c.bf16 %v945_v62, %v944_v60 }
 0x844   :  { %1033 = vrot.lane.b32.xlu0 %v3618_v1, %s3303_s15  ;;  %v960_v23 = vsel %vm247_vm5, %v3618_v1, 0 }
 0x888   :  { %v756_v3 = vpop.xlane.xlu0 %755 }
 0x889   :  { %v760_v4 = vmul.f32 0.03125, %v756_v3 }
 0x88b   :  { %v762_v5 = vadd.f32 1e-05, %v760_v4 }
 0x88c   :  { %v759_v6 = vpop.xlane.xlu1 %758 }
 0x88d   :  { %3203 = vrsqrt.f32 %v762_v5  ;;  %v761_v7 = vmul.f32 0.03125, %v759_v6 }
 0x88f   :  { %v763_v8 = vadd.f32 1e-05, %v761_v7 }
 0x891   :  { %3205 = vrsqrt.f32 %v763_v8 }
 0x89a   :  { %v3204_v9 = vpop.eup %3203 }
 0x89b   :  { %v766_v10 = vmul.f32 %v3204_v9, %v750_v34  ;;  %v788_v34 = vrot.slane %v3433_v21, %v787_v31 }
 0x89d   :  { %v772_v15 = vmul.f32 %v771_v11, %v766_v10 }
 0x89e   :  { %v3206_v13 = vpop.eup %3205 }
 0x89f   :  { %v767_v14 = vmul.f32 %v3206_v13, %v751_v41  ;;  %v3630_v18 = vadd.f32 %v777_v16, %v772_v15 }
 0x8a1   :  { %v773_v17 = vmul.f32 %v771_v11, %v767_v14 }
 0x8a3   :  { %v3632_v22 = vadd.f32 %v777_v16, %v773_v17 }
 0x8a5   :  { %v780_v38 = vpack.c.bf16 %v3632_v22, %v3630_v18 }
 0x8a7   :  { %2929 = vmatmul.mubr.msk.bf16.vlgmr.msra.gmra.mxu1 %vm177_vm4, %v780_v38 }
 0x8a8   :  { %2933 = vmatpush3.bf16.xpose.msra.mxu1 %v960_v23  ;;  %2936 = vmatprep.mubr.msk.bf16.mxu1 %vm3300_vm0, %v3299_v2 }
 0x8a9   :  { %2934 = vmatprep.subr.bf16.mxu1 %v3299_v2 }
 0x8ae   :  { %v1032_v28 = vpop.permute.xlu1 %1031 }
 0x8af   :  { %v1039_v29 = vsel %vm247_vm5, %v1032_v28, 0 }
 0x8b0   :  { %2935 = vmatpush3.bf16.xpose.msra.mxu1 %v957_v24 }
 0x8b1   :  { %2948 = vmatprep.subr.bf16.mxu1 %v3299_v2 }
 0x8b6   :  { %v1034_v40 = vpop.permute.xlu0 %1033 }
 0x8b7   :  { %v1042_v26 = vsel %vm247_vm5, %v1034_v40, 0 }
 0x8b8   :  { %2941 = vmatpush3.bf16.xpose.msra.mxu0 %v1042_v26 }
 0x8b9   :  { %2942 = vmatprep.subr.bf16.mxu0 %v3299_v2 }
 0x8c0   :  { %2943 = vmatpush3.bf16.xpose.msra.mxu0 %v1039_v29 }
 0x8c1   :  { %2956 = vmatprep.subr.bf16.mxu0 %v3299_v2 }
 0x967   :  { %v838_v33 = vpop.f32.mrf.mxu1 }
 0x968   :  { %v839_v39 = vadd.f32 %v838_v33, %v788_v34 }
 0x969   :  { %v2930_v35 = vpop.f32.mrf.mxu1 }
 0x96b   :  { %v841_v37 = vpop.f32.mrf.mxu1 }
 0x96c   :  { %v842_v41 = vadd.f32 %v841_v37, %v788_v34 }
 0x96d   :  { %v2931_v43 = vpop.f32.mrf.mxu1 }
 0x96e   :  { %v3653_v44 = vpack.c.bf16 %v842_v41, %v839_v39 }
 0x970   :  { %1027 = vrot.lane.b32.xlu1 %v3653_v44, %s3303_s15  ;;  %2937 = vmatmul.mubr.msk.bf16.vlgmr.msra.gmra.mxu1 %vm247_vm5, %v3653_v44 }
 0x971   :  { %2952 = vmatprep.mubr.msk.bf16.mxu1 %vm3300_vm0, %v3299_v2 }
 0x9e2   :  { %v1028_v45 = vpop.permute.xlu1 %1027 }
 0x9e3   :  { %2945 = vmatmul.mubr.msk.bf16.vlgmr.msra.gmra.mxu0 %vm247_vm5, %v1028_v45 }
 0x9e4   :  { %2960 = vmatprep.mubr.msk.bf16.mxu0 %vm3300_vm0, %v3299_v2 }
 0xa30   :  { %v996_v21 = vpop.f32.mrf.mxu1 }
 0xa31   :  { %v997_v6 = vadd.f32 %v996_v21, %v3669_v50 }
 0xa32   :  { %v2938_v46 = vpop.f32.mrf.mxu1 }
 0xa33   :  { %v1003_v7 = vsel %vm177_vm4, %v997_v6, -inf  ;;  %v952_v46 = vpack.c.bf16 %v3664_v49, %v3614_v59 }
 0xa34   :  { %v999_v36 = vpop.f32.mrf.mxu1 }
 0xa35   :  { %v1000_v24 = vadd.f32 %v999_v36, %v3676_v61 }
 0xa36   :  { %v2939_v47 = vpop.f32.mrf.mxu1 }
 0xa37   :  { %v1006_v40 = vsel %vm177_vm4, %v1000_v24, -inf }
 0xaa3   :  { %v1078_v51 = vpop.f32.mrf.mxu0 }
 0xaa4   :  { %v1079_v53 = vadd.f32 %v1078_v51, %v3669_v50 }
 0xaa5   :  { %v2946_v58 = vpop.f32.mrf.mxu0 }
 0xaa6   :  { %v1085_v60 = vsel %vm177_vm4, %v1079_v53, -inf }
 0xaa7   :  { %1086 = vmax.xlane.f32.xlu0 %v1085_v60  ;;  %v1081_v62 = vpop.f32.mrf.mxu0 }
 0xaa8   :  { %v1082_v3 = vadd.f32 %v1081_v62, %v3676_v61 }
 0xaa9   :  { %v2947_v4 = vpop.f32.mrf.mxu0 }
 0xaaa   :  { %v1088_v5 = vsel %vm177_vm4, %v1082_v3, -inf }
 0xaab   :  { %1089 = vmax.xlane.f32.xlu1 %v1088_v5 }
 0xabc   :  { %1112 = vrot.lane.b32.xlu1 %v3616_v63, %s3309_s22 }
 0xac0   :  { %1214 = vrot.lane.b32.xlu1 %v3618_v1, %s3307_s20 }
 0xac4   :  { %1212 = vrot.lane.b32.xlu1 %v3608_v56, %s3307_s20 }
 0xae8   :  { %1004 = vmax.xlane.f32.xlu1 %v1003_v7 }
 0xb30   :  { %v1087_v8 = vpop.xlane.xlu0 %1086 }
 0xb31   :  { %v1091_v9 = vsub.f32 %v1079_v53, %v1087_v8 }
 0xb33   :  { %v1093_v10 = vmul.f32 1.442695, %v1091_v9 }
 0xb34   :  { %v1090_v11 = vpop.xlane.xlu1 %1089 }
 0xb35   :  { %3207 = vpow2.f32 %v1093_v10  ;;  %v1092_v13 = vsub.f32 %v1082_v3, %v1090_v11 }
 0xb37   :  { %v1095_v14 = vmul.f32 1.442695, %v1092_v13 }
 0xb38   :  { %v1113_v15 = vpop.permute.xlu1 %1112 }
 0xb39   :  { %3209 = vpow2.f32 %v1095_v14  ;;  %2949 = vmatpush3.bf16.msra.mxu1 %v1113_v15 }
 0xb3a   :  { %2950 = vmatprep.subr.bf16.mxu1 %v3299_v2 }
 0xb3c   :  { %v1215_v39 = vpop.permute.xlu1 %1214 }
 0xb3d   :  { %v1223_v43 = vsel %vm247_vm5, %v1215_v39, 0 }
 0xb40   :  { %v1213_v45 = vpop.permute.xlu1 %1212 }
 0xb41   :  { %v1220_v21 = vsel %vm247_vm5, %v1213_v45, 0 }
 0xb42   :  { %v3208_v16 = vpop.eup %3207 }
 0xb43   :  { %v1097_v17 = vsel %vm177_vm4, %v3208_v16, 0.0 }
 0xb44   :  { %1098 = vadd.xlane.f32.xlu0 %v1097_v17 }
 0xb46   :  { %v3210_v38 = vpop.eup %3209 }
 0xb47   :  { %v1100_v23 = vsel %vm177_vm4, %v3210_v38, 0.0 }
 0xb48   :  { %1101 = vadd.xlane.f32.xlu0 %v1100_v23 }
 0xb5e   :  { %1110 = vrot.lane.b32.xlu0 %v3604_v54, %s3309_s22 }
 0xb62   :  { %1210 = vrot.lane.b32.xlu0 %v3653_v44, %s3307_s20 }
 0xb71   :  { %v1005_v47 = vpop.xlane.xlu1 %1004 }
 0xb72   :  { %v1009_v51 = vsub.f32 %v997_v6, %v1005_v47 }
 0xb74   :  { %v1011_v49 = vmul.f32 1.442695, %v1009_v51 }
 0xb81   :  { %1007 = vmax.xlane.f32.xlu0 %v1006_v40 }
 0xbcd   :  { %v1099_v26 = vpop.xlane.xlu0 %1098 }
 0xbce   :  { %3211 = vrcp.f32 %v1099_v26 }
 0xbd1   :  { %v1102_v28 = vpop.xlane.xlu0 %1101 }
 0xbd2   :  { %3213 = vrcp.f32 %v1102_v28 }
 0xbd3   :  { %3215 = vpow2.f32 %v1011_v49 }
 0xbd5   :  { %v1111_v29 = vpop.permute.xlu0 %1110 }
 0xbd6   :  { %2951 = vmatpush3.bf16.msra.mxu1 %v1111_v29 }
 0xbd7   :  { %2964 = vmatprep.subr.bf16.mxu1 %v3299_v2 }
 0xbd9   :  { %v1211_v36 = vpop.permute.xlu0 %1210 }
 0xbdb   :  { %v3212_v33 = vpop.eup %3211 }
 0xbdc   :  { %v1105_v35 = vmul.f32 %v3212_v33, %v3208_v16 }
 0xbdf   :  { %v3214_v34 = vpop.eup %3213 }
 0xbe0   :  { %v1106_v37 = vmul.f32 %v3214_v34, %v3210_v38  ;;  %v3216_v7 = vpop.eup %3215 }
 0xbe1   :  { %v1015_v11 = vsel %vm177_vm4, %v3216_v7, 0.0 }
 0xbe2   :  { %v1107_v41 = vpack.c.bf16 %v1106_v37, %v1105_v35 }
 0xbe4   :  { %2953 = vmatmul.mubr.msk.bf16.vlgmr.msra.gmra.mxu1 %vm177_vm4, %v1107_v41 }
 0xbe5   :  { %2965 = vmatpush3.bf16.xpose.msra.mxu1 %v1223_v43  ;;  %2968 = vmatprep.mubr.msk.bf16.mxu1 %vm3300_vm0, %v3299_v2 }
 0xbe6   :  { %2966 = vmatprep.subr.bf16.mxu1 %v3299_v2 }
 0xbed   :  { %2967 = vmatpush3.bf16.xpose.msra.mxu1 %v1220_v21 }
 0xbee   :  { %2988 = vmatprep.subr.bf16.mxu1 %v3299_v2 }
 0xbf4   :  { %2969 = vmatmul.mubr.msk.bf16.vlgmr.msra.gmra.mxu1 %vm247_vm5, %v1211_v36 }
 0xbf5   :  { %2989 = vmatpush3.bf16.msra.mxu1 %v952_v46  ;;  %2992 = vmatprep.mubr.msk.bf16.mxu1 %vm3300_vm0, %v3299_v2 }
 0xbf6   :  { %2990 = vmatprep.subr.bf16.mxu1 %v3299_v2 }
 0xbf9   :  { %2991 = vmatpush3.bf16.msra.mxu1 %v950_v57 }
 0xbfa   :  { %2996 = vmatprep.subr.bf16.mxu1 %v3299_v2 }
 0xc0a   :  { %v1008_v53 = vpop.xlane.xlu0 %1007 }
 0xc0b   :  { %v1010_v60 = vsub.f32 %v1000_v24, %v1008_v53 }
 0xc0d   :  { %v1013_v4 = vmul.f32 1.442695, %v1010_v60 }
 0xc0f   :  { %3217 = vpow2.f32 %v1013_v4 }
 0xc1c   :  { %v3218_v13 = vpop.eup %3217 }
 0xc1d   :  { %v1018_v14 = vsel %vm177_vm4, %v3218_v13, 0.0 }
 0xca4   :  { %v3715_v58 = vpop.f32.mrf.mxu1 }
 0xca6   :  { %v2954_v59 = vpop.f32.mrf.mxu1 }
 0xca8   :  { %v3717_v62 = vpop.f32.mrf.mxu1 }
 0xcaa   :  { %v2955_v3 = vpop.f32.mrf.mxu1 }
 0xcb4   :  { %v1259_v5 = vpop.f32.mrf.mxu1 }
 0xcb5   :  { %v1260_v42 = vadd.f32 %v1259_v5, %v3669_v50 }
 0xcb6   :  { %v2970_v55 = vpop.f32.mrf.mxu1 }
 0xcb7   :  { %v1266_v57 = vsel %vm177_vm4, %v1260_v42, -inf }
 0xcb8   :  { %1267 = vmax.xlane.f32.xlu0 %v1266_v57  ;;  %v1262_v6 = vpop.f32.mrf.mxu1 }
 0xcb9   :  { %v1263_v8 = vadd.f32 %v1262_v6, %v3676_v61 }
 0xcba   :  { %v2971_v9 = vpop.f32.mrf.mxu1 }
 0xcbb   :  { %v1269_v10 = vsel %vm177_vm4, %v1263_v8, -inf }
 0xcbc   :  { %1270 = vmax.xlane.f32.xlu1 %v1269_v10  ;;  %1016 = vadd.xlane.f32.xlu0 %v1015_v11 }
 0xcc0   :  { %1019 = vadd.xlane.f32.xlu1 %v1018_v14 }
 0xcd1   :  { %1160 = vrot.lane.b32.xlu1 %v3604_v54, %s3305_s5 }
 0xcd2   :  { %1162 = vrot.lane.b32.xlu0 %v3616_v63, %s3305_s5 }
 0xcd5   :  { %1291 = vrot.lane.b32.xlu1 %v3616_v63, %s3301_s28 }
 0xd41   :  { %v1268_v15 = vpop.xlane.xlu0 %1267 }
 0xd42   :  { %v1272_v16 = vsub.f32 %v1260_v42, %v1268_v15 }
 0xd44   :  { %v1274_v17 = vmul.f32 1.442695, %v1272_v16 }
 0xd45   :  { %v1017_v38 = vpop.xlane.xlu0 %1016  ;;  %v1271_v23 = vpop.xlane.xlu1 %1270 }
 0xd46   :  { %3219 = vpow2.f32 %v1274_v17  ;;  %v1273_v24 = vsub.f32 %v1263_v8, %v1271_v23 }
 0xd47   :  { %3221 = vrcp.f32 %v1017_v38 }
 0xd48   :  { %v1276_v40 = vmul.f32 1.442695, %v1273_v24 }
 0xd49   :  { %v1163_v26 = vpop.permute.xlu0 %1162  ;;  %v1020_v28 = vpop.xlane.xlu1 %1019 }
 0xd4a   :  { %3223 = vpow2.f32 %v1276_v40  ;;  %2957 = vmatpush3.bf16.msra.mxu0 %v1163_v26 }
 0xd4b   :  { %3225 = vrcp.f32 %v1020_v28  ;;  %2958 = vmatprep.subr.bf16.mxu0 %v3299_v2 }
 0xd4d   :  { %v1161_v29 = vpop.permute.xlu1 %1160 }
 0xd4e   :  { %2959 = vmatpush3.bf16.msra.mxu0 %v1161_v29 }
 0xd4f   :  { %2972 = vmatprep.subr.bf16.mxu0 %v3299_v2 }
 0xd51   :  { %v1292_v21 = vpop.permute.xlu1 %1291 }
 0xd53   :  { %v3220_v63 = vpop.eup %3219 }
 0xd54   :  { %v1278_v33 = vsel %vm177_vm4, %v3220_v63, 0.0  ;;  %v3222_v34 = vpop.eup %3221 }
 0xd55   :  { %1279 = vadd.xlane.f32.xlu0 %v1278_v33  ;;  %v1023_v41 = vmul.f32 %v3222_v34, %v3216_v7 }
 0xd57   :  { %v3224_v35 = vpop.eup %3223 }
 0xd58   :  { %v3226_v37 = vpop.eup %3225  ;;  %v1281_v39 = vsel %vm177_vm4, %v3224_v35, 0.0 }
 0xd59   :  { %1282 = vadd.xlane.f32.xlu1 %v1281_v39  ;;  %v1024_v43 = vmul.f32 %v3226_v37, %v3218_v13 }
 0xd5b   :  { %v1025_v45 = vpack.c.bf16 %v1024_v43, %v1023_v41 }
 0xd5d   :  { %2961 = vmatmul.mubr.msk.bf16.vlgmr.msra.gmra.mxu0 %vm177_vm4, %v1025_v45 }
 0xd5e   :  { %2973 = vmatpush3.bf16.msra.mxu0 %v1292_v21  ;;  %2976 = vmatprep.mubr.msk.bf16.mxu0 %vm3300_vm0, %v3299_v2 }
 0xd5f   :  { %2974 = vmatprep.subr.bf16.mxu0 %v3299_v2 }
 0xd6a   :  { %1345 = vrot.lane.b32.xlu1 %v3618_v1, %s3308_s21 }
 0xd6b   :  { %1289 = vrot.lane.b32.xlu0 %v3604_v54, %s3301_s28 }
 0xd6e   :  { %1341 = vrot.lane.b32.xlu1 %v3653_v44, %s3308_s21 }
 0xd6f   :  { %1343 = vrot.lane.b32.xlu0 %v3608_v56, %s3308_s21 }
 0xdde   :  { %v1280_v46 = vpop.xlane.xlu0 %1279 }
 0xddf   :  { %3227 = vrcp.f32 %v1280_v46 }
 0xde2   :  { %v1290_v36 = vpop.permute.xlu0 %1289  ;;  %v1283_v47 = vpop.xlane.xlu1 %1282 }
 0xde3   :  { %3229 = vrcp.f32 %v1283_v47  ;;  %2975 = vmatpush3.bf16.msra.mxu0 %v1290_v36  ;;  %v1468_v47 = vsub.s32 7, %v3424_v19  ;;  %v3165_v19 = vld [vmem:[%s4095_s11 + $0x38] sm:$0xff]  }
 0xde4   :  { %2980 = vmatprep.subr.bf16.mxu0 %v3299_v2 }
 0xde6   :  { %v1346_v49 = vpop.permute.xlu1 %1345  ;;  %v1344_v56 = vpop.permute.xlu0 %1343 }
 0xde7   :  { %v1354_v60 = vsel %vm247_vm5, %v1346_v49, 0  ;;  %v1351_v44 = vsel %vm247_vm5, %v1344_v56, 0 }
 0xdea   :  { %v1342_v3 = vpop.permute.xlu1 %1341 }
 0xdec   :  { %v3228_v51 = vpop.eup %3227 }
 0xded   :  { %v1286_v1 = vmul.f32 %v3228_v51, %v3220_v63  ;;  %v3295_v51 = vld [vmem:[%s4087_s6] sm:$0xff] }
 0xdf0   :  { %v3230_v53 = vpop.eup %3229 }
 0xdf1   :  { %v1287_v59 = vmul.f32 %v3230_v53, %v3224_v35  ;;  %v1469_v53 = vrot.slane %v3295_v51, %v1468_v47 }
 0xdf3   :  { %v1288_v54 = vpack.c.bf16 %v1287_v59, %v1286_v1 }
 0xdf5   :  { %2977 = vmatmul.mubr.msk.bf16.vlgmr.msra.gmra.mxu0 %vm177_vm4, %v1288_v54 }
 0xdf6   :  { %2981 = vmatpush3.bf16.xpose.msra.mxu0 %v1354_v60  ;;  %2984 = vmatprep.mubr.msk.bf16.mxu0 %vm3300_vm0, %v3299_v2 }
 0xdf7   :  { %2982 = vmatprep.subr.bf16.mxu0 %v3299_v2 }
 0xdfe   :  { %2983 = vmatpush3.bf16.xpose.msra.mxu0 %v1351_v44 }
 0xdff   :  { %3004 = vmatprep.subr.bf16.mxu0 %v3299_v2 }
 0xe05   :  { %2985 = vmatmul.mubr.msk.bf16.vlgmr.msra.gmra.mxu0 %vm247_vm5, %v1342_v3 }
 0xe06   :  { %3012 = vmatprep.mubr.msk.bf16.mxu0 %vm3300_vm0, %v3299_v2 }
 0xe1d   :  { %v1203_v4 = vpop.f32.mrf.mxu0 }
 0xe1e   :  { %v1204_v57 = vadd.f32 %v1203_v4, %v3715_v58 }
 0xe1f   :  { %v2962_v5 = vpop.f32.mrf.mxu0 }
 0xe21   :  { %v1206_v42 = vpop.f32.mrf.mxu0 }
 0xe22   :  { %v1207_v9 = vadd.f32 %v1206_v42, %v3717_v62 }
 0xe23   :  { %v2963_v55 = vpop.f32.mrf.mxu0 }
 0xeb5   :  { %v1332_v7 = vpop.f32.mrf.mxu0 }
 0xeb6   :  { %v1339_v6 = vadd.f32 %v1332_v7, %v1204_v57 }
 0xeb7   :  { %v2978_v8 = vpop.f32.mrf.mxu0 }
 0xeb9   :  { %v1335_v10 = vpop.f32.mrf.mxu0 }
 0xeba   :  { %v1340_v11 = vadd.f32 %v1335_v10, %v1207_v9 }
 0xebb   :  { %v2979_v13 = vpop.f32.mrf.mxu0 }
 0xec5   :  { %v1390_v14 = vpop.f32.mrf.mxu0 }
 0xec6   :  { %v1391_v15 = vadd.f32 %v1390_v14, %v3669_v50 }
 0xec7   :  { %v2986_v16 = vpop.f32.mrf.mxu0 }
 0xec8   :  { %v1397_v17 = vsel %vm177_vm4, %v1391_v15, -inf }
 0xec9   :  { %1398 = vmax.xlane.f32.xlu0 %v1397_v17  ;;  %v1393_v38 = vpop.f32.mrf.mxu0 }
 0xeca   :  { %v1394_v23 = vadd.f32 %v1393_v38, %v3676_v61 }
 0xecb   :  { %v2987_v24 = vpop.f32.mrf.mxu0 }
 0xecc   :  { %v1400_v58 = vsel %vm177_vm4, %v1394_v23, -inf }
 0xecd   :  { %1401 = vmax.xlane.f32.xlu1 %v1400_v58 }
 0xf52   :  { %v1399_v40 = vpop.xlane.xlu0 %1398 }
 0xf53   :  { %v1403_v26 = vsub.f32 %v1391_v15, %v1399_v40  ;;  %v3150_v15 = vld [vmem:[%s4094_s10] sm:$0xff]   ;;  %v3792_v40 = vld [vmem:[%s4087_s6 + $0x8] sm:$0xff] }
 0xf55   :  { %v1405_v62 = vmul.f32 1.442695, %v1403_v26  ;;  %v1503_v26 = vrot.slane %v3792_v40, %v3454_v32 }
 0xf56   :  { %v1402_v28 = vpop.xlane.xlu1 %1401 }
 0xf57   :  { %3231 = vpow2.f32 %v1405_v62  ;;  %v1404_v29 = vsub.f32 %v1394_v23, %v1402_v28  ;;  %v1509_v28 = vrot.slane %v3792_v40, %v3428_v20 }
 0xf59   :  { %v1407_v63 = vmul.f32 1.442695, %v1404_v29 }
 0xf5b   :  { %3233 = vpow2.f32 %v1407_v63 }
 0xf64   :  { %v3232_v33 = vpop.eup %3231 }
 0xf65   :  { %v1409_v34 = vsel %vm177_vm4, %v3232_v33, 0.0 }
 0xf66   :  { %1410 = vadd.xlane.f32.xlu0 %v1409_v34 }
 0xf68   :  { %v3234_v35 = vpop.eup %3233 }
 0xf69   :  { %v1412_v37 = vsel %vm177_vm4, %v3234_v35, 0.0 }
 0xf6a   :  { %1413 = vadd.xlane.f32.xlu0 %v1412_v37 }
 0xfef   :  { %v1411_v39 = vpop.xlane.xlu0 %1410 }
 0xff0   :  { %3235 = vrcp.f32 %v1411_v39 }
 0xff3   :  { %v1414_v41 = vpop.xlane.xlu0 %1413 }
 0xff4   :  { %3237 = vrcp.f32 %v1414_v41 }
 0xffd   :  { %v3236_v43 = vpop.eup %3235 }
 0xffe   :  { %v1417_v21 = vmul.f32 %v3236_v43, %v3232_v33  ;;  %v3151_v43 = vld [vmem:[%s4095_s11 + $0x18] sm:$0xff]  }
 0xfff   :  { %3005 = vmatpush3.bf16.msra.mxu0 %v3151_v43 }
0x1000   :  { %3006 = vmatprep.subr.bf16.mxu0 %v3299_v2 }
0x1001   :  { %v3238_v45 = vpop.eup %3237 }
0x1002   :  { %v1418_v46 = vmul.f32 %v3238_v45, %v3234_v35  ;;  %v3152_v45 = vld [vmem:[%s4095_s11 + $0x10] sm:$0xff]  }
0x1003   :  { %3007 = vmatpush3.bf16.msra.mxu0 %v3152_v45 }
0x1004   :  { %v1419_v36 = vpack.c.bf16 %v1418_v46, %v1417_v21  ;;  %3008 = vmatprep.subr.bf16.mxu0 %v3299_v2  ;;  %v3153_v21 = vld [vmem:[%s4095_s11 + $0x8] sm:$0xff]   ;;  %v3154_v46 = vld [vmem:[%s4095_s11] sm:$0xff]  }
0x1006   :  { %2993 = vmatmul.mubr.msk.bf16.vlgmr.msra.gmra.mxu1 %vm177_vm4, %v1419_v36 }
0x1007   :  { %3000 = vmatprep.mubr.msk.bf16.mxu1 %vm3300_vm0, %v3299_v2  ;;  %3009 = vmatpush3.bf16.msra.mxu0 %v3153_v21 }
0x1008   :  { %3010 = vmatprep.subr.bf16.mxu0 %v3299_v2 }
0x100b   :  { %3011 = vmatpush3.bf16.msra.mxu0 %v3154_v46 }
0x100c   :  { %3024 = vmatprep.subr.bf16.mxu0 %v3299_v2 }
0x10c6   :  { %v1457_v1 = vpop.f32.mrf.mxu1 }
0x10c7   :  { %v1464_v59 = vadd.f32 %v1457_v1, %v1339_v6 }
0x10c8   :  { %v2994_v49 = vpop.f32.mrf.mxu1 }
0x10c9   :  { %v1470_v54 = vadd.f32 %v1469_v53, %v1464_v59 }
0x10ca   :  { %v1460_v60 = vpop.f32.mrf.mxu1 }
0x10cb   :  { %v1465_v56 = vadd.f32 %v1460_v60, %v1340_v11  ;;  %v1472_v44 = vadd.f32 %v1470_v54, %v3630_v18 }
0x10cc   :  { %v2995_v3 = vpop.f32.mrf.mxu1 }
0x10cd   :  { %v1471_v4 = vadd.f32 %v1469_v53, %v1465_v56  ;;  %v1474_v5 = vsel %vm177_vm4, %v1472_v44, 0.0 }
0x10ce   :  { %1475 = vadd.xlane.f32.xlu1 %v1474_v5 }
0x10cf   :  { %v1473_v42 = vadd.f32 %v1471_v4, %v3632_v22  ;;  %v3149_v22 = vld [vmem:[%s4094_s10 + $0x8] sm:$0xff]  }
0x10d0   :  { %2997 = vmatpush3.bf16.msra.mxu1 %v3149_v22 }
0x10d1   :  { %v1477_v55 = vsel %vm177_vm4, %v1473_v42, 0.0  ;;  %2998 = vmatprep.subr.bf16.mxu1 %v3299_v2 }
0x10d2   :  { %1478 = vadd.xlane.f32.xlu0 %v1477_v55 }
0x10d4   :  { %2999 = vmatpush3.bf16.msra.mxu1 %v3150_v15 }
0x10d5   :  { %3016 = vmatprep.subr.bf16.mxu1 %v3299_v2 }
0x1157   :  { %v1476_v57 = vpop.xlane.xlu1 %1475 }
0x1158   :  { %v1480_v7 = vmul.f32 0.03125, %v1476_v57 }
0x115a   :  { %v1482_v8 = vsub.f32 %v1472_v44, %v1480_v7 }
0x115b   :  { %v1479_v6 = vpop.xlane.xlu0 %1478 }
0x115c   :  { %v1481_v9 = vmul.f32 0.03125, %v1479_v6  ;;  %v1484_v10 = vmul.f32 %v1482_v8, %v1482_v8 }
0x115e   :  { %v1483_v13 = vsub.f32 %v1473_v42, %v1481_v9  ;;  %v1486_v11 = vsel %vm177_vm4, %v1484_v10, 0.0 }
0x115f   :  { %1487 = vadd.xlane.f32.xlu1 %v1486_v11 }
0x1160   :  { %v1485_v18 = vmul.f32 %v1483_v13, %v1483_v13 }
0x1162   :  { %v1489_v14 = vsel %vm177_vm4, %v1485_v18, 0.0 }
0x1163   :  { %1490 = vadd.xlane.f32.xlu0 %v1489_v14 }
0x11e8   :  { %v1488_v16 = vpop.xlane.xlu1 %1487 }
0x11e9   :  { %v1492_v17 = vmul.f32 0.03125, %v1488_v16 }
0x11eb   :  { %v1494_v38 = vadd.f32 1e-06, %v1492_v17 }
0x11ec   :  { %v1491_v23 = vpop.xlane.xlu0 %1490 }
0x11ed   :  { %3239 = vrsqrt.f32 %v1494_v38  ;;  %v1493_v24 = vmul.f32 0.03125, %v1491_v23 }
0x11ef   :  { %v1495_v58 = vadd.f32 1e-06, %v1493_v24 }
0x11f1   :  { %3241 = vrsqrt.f32 %v1495_v58 }
0x11fa   :  { %v3240_v62 = vpop.eup %3239 }
0x11fb   :  { %v1498_v29 = vmul.f32 %v3240_v62, %v1482_v8  ;;  %v3156_v62 = vld [vmem:[%s4092_s8 + $0x10] sm:$0xff]  }
0x11fd   :  { %v1504_v63 = vmul.f32 %v1503_v26, %v1498_v29 }
0x11fe   :  { %v3242_v33 = vpop.eup %3241 }
0x11ff   :  { %v1499_v34 = vmul.f32 %v3242_v33, %v1483_v13  ;;  %v1510_v35 = vadd.f32 %v1509_v28, %v1504_v63 }
0x1201   :  { %v1505_v37 = vmul.f32 %v1503_v26, %v1499_v34  ;;  %v3155_v26 = vld [vmem:[%s4092_s8 + $0x18] sm:$0xff]  }
0x1203   :  { %v1511_v39 = vadd.f32 %v1509_v28, %v1505_v37  ;;  %v3159_v28 = vld [vmem:[%s4090_s9 + $0x34] ss:$8 sps:$4 sm:$0xff]  }
0x1205   :  { %v1512_v41 = vpack.c.bf16 %v1511_v39, %v1510_v35 }
0x1207   :  { %3001 = vmatmul.mubr.msk.bf16.vlgmr.msra.gmra.mxu1 %vm177_vm4, %v1512_v41  ;;  %v1691_v41 = vrot.slane %v3792_v40, %v3548_v48 }
0x1208   :  { %3020 = vmatprep.mubr.msk.bf16.mxu1 %vm3300_vm0, %v3299_v2  ;;  %3017 = vmatpush3.bf16.msra.mxu1 %v3155_v26 }
0x1209   :  { %3018 = vmatprep.subr.bf16.mxu1 %v3299_v2 }
0x120c   :  { %3019 = vmatpush3.bf16.msra.mxu1 %v3156_v62 }
0x120d   :  { %1803 = vmatprep.subr.bf16.mxu1 %v3159_v28 }
0x12c7   :  { %v1566_v36 = vpop.f32.mrf.mxu1 }
0x12c8   :  { %v1575_v51 = vmul.f32 0.70710677, %v1566_v36  ;;  %v1573_v44 = vmul.f32 0.5, %v1566_v36  ;;  %v1697_v36 = vrot.slane %v3792_v40, %v770_v52  ;;  %v3160_v52 = vld [vmem:[%s4090_s9 + $0x20] ss:$8 sps:$4 sm:$0xff]  }
0x12c9   :  { %v3002_v53 = vpop.f32.mrf.mxu1 }
0x12ca   :  { %3243 = verf.f32 %v1575_v51 }
0x12cb   :  { %v1569_v1 = vpop.f32.mrf.mxu1 }
0x12cc   :  { %v1576_v59 = vmul.f32 0.70710677, %v1569_v1  ;;  %v1574_v3 = vmul.f32 0.5, %v1569_v1 }
0x12cd   :  { %v3003_v49 = vpop.f32.mrf.mxu1 }
0x12ce   :  { %3245 = verf.f32 %v1576_v59  ;;  %v3157_v59 = vld [vmem:[%s4090_s9 + $0x30] ss:$8 sps:$4 sm:$0xff]  }
0x12d7   :  { %v3244_v54 = vpop.eup %3243 }
0x12d8   :  { %v1579_v60 = vadd.f32 1.0, %v3244_v54  ;;  %v3162_v54 = vld [vmem:[%s4090_s9 + $0x24] ss:$8 sps:$4 sm:$0xff]  }
0x12da   :  { %v1581_v5 = vmul.f32 %v1579_v60, %v1573_v44 }
0x12db   :  { %v3246_v56 = vpop.eup %3245 }
0x12dc   :  { %v1580_v4 = vadd.f32 1.0, %v3246_v56 }
0x12de   :  { %v1582_v42 = vmul.f32 %v1580_v4, %v1574_v3 }
0x12e0   :  { %v1583_v55 = vpack.c.bf16 %v1582_v42, %v1581_v5  ;;  %v1847_v5 = vrot.slane %v3792_v40, %v787_v31 }
0x12e2   :  { %3013 = vmatmul.mubr.msk.bf16.vlgmr.msra.gmra.mxu0 %vm99_vm3, %v1583_v55 }
0x12e3   :  { %3028 = vmatprep.mubr.msk.bf16.mxu0 %vm3300_vm0, %v3299_v2 }
0x13a2   :  { %v1653_v57 = vpop.f32.mrf.mxu0 }
0x13a3   :  { %v1660_v7 = vadd.f32 %v1653_v57, %v1510_v35 }
0x13a4   :  { %v3014_v8 = vpop.f32.mrf.mxu0 }
0x13a5   :  { %v1662_v6 = vsel %vm177_vm4, %v1660_v7, 0.0 }
0x13a6   :  { %1663 = vadd.xlane.f32.xlu1 %v1662_v6  ;;  %v1656_v9 = vpop.f32.mrf.mxu0 }
0x13a7   :  { %v1661_v10 = vadd.f32 %v1656_v9, %v1511_v39 }
0x13a8   :  { %v3015_v13 = vpop.f32.mrf.mxu0 }
0x13a9   :  { %v1665_v11 = vsel %vm177_vm4, %v1661_v10, 0.0 }
0x13aa   :  { %1666 = vadd.xlane.f32.xlu0 %v1665_v11 }
0x142f   :  { %v1664_v18 = vpop.xlane.xlu1 %1663 }
0x1430   :  { %v1668_v14 = vmul.f32 0.03125, %v1664_v18 }
0x1432   :  { %v1670_v22 = vsub.f32 %v1660_v7, %v1668_v14 }
0x1433   :  { %v1667_v15 = vpop.xlane.xlu0 %1666 }
0x1434   :  { %v1669_v16 = vmul.f32 0.03125, %v1667_v15  ;;  %v1672_v17 = vmul.f32 %v1670_v22, %v1670_v22 }
0x1436   :  { %v1671_v38 = vsub.f32 %v1661_v10, %v1669_v16  ;;  %v1674_v23 = vsel %vm177_vm4, %v1672_v17, 0.0  ;;  %v1709_v10 = vrot.slane %v3792_v40, %v776_v12 }
0x1437   :  { %1675 = vadd.xlane.f32.xlu1 %v1674_v23 }
0x1438   :  { %v1673_v24 = vmul.f32 %v1671_v38, %v1671_v38 }
0x143a   :  { %v1677_v58 = vsel %vm177_vm4, %v1673_v24, 0.0 }
0x143b   :  { %1678 = vadd.xlane.f32.xlu0 %v1677_v58 }
0x14c0   :  { %v1676_v29 = vpop.xlane.xlu1 %1675 }
0x14c1   :  { %v1680_v63 = vmul.f32 0.03125, %v1676_v29 }
0x14c3   :  { %v1682_v33 = vadd.f32 1e-06, %v1680_v63 }
0x14c4   :  { %v1679_v34 = vpop.xlane.xlu0 %1678 }
0x14c5   :  { %3247 = vrsqrt.f32 %v1682_v33  ;;  %v1681_v35 = vmul.f32 0.03125, %v1679_v34 }
0x14c7   :  { %v1683_v37 = vadd.f32 1e-06, %v1681_v35 }
0x14c9   :  { %3249 = vrsqrt.f32 %v1683_v37 }
0x14d2   :  { %v3248_v39 = vpop.eup %3247 }
0x14d3   :  { %v1686_v43 = vmul.f32 %v3248_v39, %v1670_v22 }
0x14d5   :  { %v1692_v46 = vmul.f32 %v1691_v41, %v1686_v43 }
0x14d6   :  { %v3250_v45 = vpop.eup %3249 }
0x14d7   :  { %v1687_v21 = vmul.f32 %v3250_v45, %v1671_v38  ;;  %v3839_v53 = vadd.f32 %v1697_v36, %v1692_v46 }
0x14d9   :  { %v1693_v51 = vmul.f32 %v1691_v41, %v1687_v21 }
0x14db   :  { %v3841_v1 = vadd.f32 %v1697_v36, %v1693_v51 }
0x14dd   :  { %v1700_v49 = vpack.c.bf16 %v3841_v1, %v3839_v53 }
0x14df   :  { %3021 = vmatmul.mubr.msk.bf16.vlgmr.msra.gmra.mxu1 %vm177_vm4, %v1700_v49 }
0x14e0   :  { %1804 = vmatpush1.bf16.msra.mxu1 %v3157_v59  ;;  %1823 = vmatprep.mubr.bf16.mxu1 %v3298_v0 }
0x14e1   :  { %1805 = vmatprep.subr.bf16.mxu1 %v3162_v54 }
0x14e4   :  { %1806 = vmatpush1.bf16.msra.mxu1 %v3160_v52 }
0x14e5   :  { %3032 = vmatprep.subr.bf16.mxu1 %v3299_v2 }
0x14e7   :  { %2737 = vmatmul.mubr.msk.bf16.vlgmr.msra.gmra.mxu1 %vm177_vm4, %v3573_v27 }
0x14e8   :  { %1833 = vmatprep.mubr.bf16.mxu1 %v3298_v0 }
0x14ef   :  { %2738 = vmatmul.mubr.msk.bf16.gmra.mxu1 %vm177_vm4, %v3582_v30 }
0x14f0   :  { %3036 = vmatprep.mubr.msk.bf16.mxu1 %vm3300_vm0, %v3299_v2 }
0x159f   :  { %v1759_v60 = vpop.f32.mrf.mxu1 }
0x15a0   :  { %v1760_v15 = vadd.f32 %v1759_v60, %v1709_v10 }
0x15a1   :  { %v3022_v56 = vpop.f32.mrf.mxu1 }
0x15a3   :  { %v1762_v44 = vpop.f32.mrf.mxu1 }
0x15a4   :  { %v1763_v14 = vadd.f32 %v1762_v44, %v1709_v10 }
0x15a5   :  { %v3023_v3 = vpop.f32.mrf.mxu1 }
0x15a6   :  { %v3892_v17 = vpack.c.bf16 %v1763_v14, %v1760_v15 }
0x15a7   :  { %v1825_v4 = vpop.f32.mrf.mxu1 }
0x15a8   :  { %v1848_v55 = vadd.f32 %v1847_v5, %v1825_v4 }
0x15a9   :  { %v3867_v42 = vpop.f32.mrf.mxu1 }
0x15ab   :  { %v1829_v27 = vpop.f32.mrf.mxu1 }
0x15ac   :  { %v1849_v0 = vadd.f32 %v1847_v5, %v1829_v27  ;;  %v3869_v57 = vpack.c.bf16 %v1829_v27, %v1825_v4 }
0x15ad   :  { %v3871_v30 = vpop.f32.mrf.mxu1 }
0x15ae   :  { %v3873_v7 = vpack.c.bf16 %v1849_v0, %v1848_v55  ;;  %v1856_v8 = vpack.c.bf16 %v3871_v30, %v3867_v42 }
0x15af   :  { %v1835_v6 = vpop.f32.mrf.mxu1 }
0x15b0   :  { %1937 = vrot.lane.b32.xlu0 %v3873_v7, %s3303_s15  ;;  %v1850_v13 = vadd.f32 %v1847_v5, %v1835_v6  ;;  %v1863_v12 = vsel %vm247_vm5, %v3873_v7, 0 }
0x15b1   :  { %v3879_v9 = vpop.f32.mrf.mxu1 }
0x15b3   :  { %v1839_v31 = vpop.f32.mrf.mxu1 }
0x15b4   :  { %v1851_v11 = vadd.f32 %v1847_v5, %v1839_v31  ;;  %v3884_v18 = vpack.c.bf16 %v1839_v31, %v1835_v6 }
0x15b5   :  { %v3911_v33 = vpop.f32.mrf.mxu1 }
0x15b6   :  { %v3886_v22 = vpack.c.bf16 %v1851_v11, %v1850_v13 }
0x15b8   :  { %1939 = vrot.lane.b32.xlu1 %v3886_v22, %s3303_s15  ;;  %v1866_v16 = vsel %vm247_vm5, %v3886_v22, 0 }
0x15b9   :  { %3025 = vmatpush3.bf16.xpose.msra.mxu0 %v1866_v16 }
0x15ba   :  { %3026 = vmatprep.subr.bf16.mxu0 %v3299_v2 }
0x15bc   :  { %1933 = vrot.lane.b32.xlu1 %v3892_v17, %s3303_s15 }
0x15c1   :  { %3027 = vmatpush3.bf16.xpose.msra.mxu0 %v1863_v12 }
0x15c2   :  { %3040 = vmatprep.subr.bf16.mxu0 %v3299_v2 }
0x15c8   :  { %3029 = vmatmul.mubr.msk.bf16.vlgmr.msra.gmra.mxu0 %vm247_vm5, %v3892_v17 }
0x15c9   :  { %3044 = vmatprep.mubr.msk.bf16.mxu0 %vm3300_vm0, %v3299_v2 }
0x1622   :  { %v1938_v24 = vpop.permute.xlu0 %1937 }
0x1623   :  { %v1945_v58 = vsel %vm247_vm5, %v1938_v24, 0 }
0x162a   :  { %v1940_v38 = vpop.permute.xlu1 %1939 }
0x162b   :  { %v1948_v23 = vsel %vm247_vm5, %v1940_v38, 0  ;;  %v1858_v38 = vpack.c.bf16 %v3911_v33, %v3879_v9 }
0x162c   :  { %3033 = vmatpush3.bf16.xpose.msra.mxu1 %v1948_v23 }
0x162d   :  { %3034 = vmatprep.subr.bf16.mxu1 %v3299_v2 }
0x162e   :  { %v1934_v26 = vpop.permute.xlu1 %1933 }
0x1634   :  { %3035 = vmatpush3.bf16.xpose.msra.mxu1 %v1945_v58 }
0x1635   :  { %3048 = vmatprep.subr.bf16.mxu1 %v3299_v2 }
0x163b   :  { %3037 = vmatmul.mubr.msk.bf16.vlgmr.msra.gmra.mxu1 %vm247_vm5, %v1934_v26 }
0x163c   :  { %3052 = vmatprep.mubr.msk.bf16.mxu1 %vm3300_vm0, %v3299_v2 }
0x1688   :  { %v1902_v62 = vpop.f32.mrf.mxu0 }
0x1689   :  { %v1903_v3 = vadd.f32 %v1902_v62, %v3669_v50 }
0x168a   :  { %v3030_v28 = vpop.f32.mrf.mxu0 }
0x168b   :  { %v1909_v5 = vsel %vm177_vm4, %v1903_v3, -inf }
0x168c   :  { %v1905_v29 = vpop.f32.mrf.mxu0 }
0x168d   :  { %v1906_v4 = vadd.f32 %v1905_v29, %v3676_v61 }
0x168e   :  { %v3031_v63 = vpop.f32.mrf.mxu0 }
0x168f   :  { %v1912_v27 = vsel %vm177_vm4, %v1906_v4, -inf }
0x16fb   :  { %v1984_v34 = vpop.f32.mrf.mxu1 }
0x16fc   :  { %v1985_v35 = vadd.f32 %v1984_v34, %v3669_v50 }
0x16fd   :  { %v3038_v37 = vpop.f32.mrf.mxu1 }
0x16fe   :  { %v1991_v39 = vsel %vm177_vm4, %v1985_v35, -inf }
0x16ff   :  { %1992 = vmax.xlane.f32.xlu1 %v1991_v39  ;;  %v1987_v41 = vpop.f32.mrf.mxu1 }
0x1700   :  { %v1988_v43 = vadd.f32 %v1987_v41, %v3676_v61 }
0x1701   :  { %v3039_v45 = vpop.f32.mrf.mxu1 }
0x1702   :  { %v1994_v21 = vsel %vm177_vm4, %v1988_v43, -inf }
0x1703   :  { %1995 = vmax.xlane.f32.xlu0 %v1994_v21  ;;  %v3972_v21 = vld [vmem:[%s4093_s4 + $0x8] sm:$0xff] }
0x1710   :  { %2016 = vrot.lane.b32.xlu1 %v3869_v57, %s3309_s22 }
0x1788   :  { %v1993_v46 = vpop.xlane.xlu1 %1992 }
0x1789   :  { %v1997_v36 = vsub.f32 %v1985_v35, %v1993_v46 }
0x178b   :  { %v1999_v51 = vmul.f32 1.442695, %v1997_v36 }
0x178c   :  { %v1996_v59 = vpop.xlane.xlu0 %1995  ;;  %v2017_v55 = vpop.permute.xlu1 %2016 }
0x178d   :  { %3251 = vpow2.f32 %v1999_v51  ;;  %v1998_v49 = vsub.f32 %v1988_v43, %v1996_v59 }
0x178f   :  { %v2001_v54 = vmul.f32 1.442695, %v1998_v49 }
0x1791   :  { %3253 = vpow2.f32 %v2001_v54 }
0x179a   :  { %v3252_v52 = vpop.eup %3251 }
0x179b   :  { %v2003_v60 = vsel %vm177_vm4, %v3252_v52, 0.0 }
0x179c   :  { %2004 = vadd.xlane.f32.xlu0 %v2003_v60 }
0x179e   :  { %v3254_v56 = vpop.eup %3253 }
0x179f   :  { %v2006_v44 = vsel %vm177_vm4, %v3254_v56, 0.0 }
0x17a0   :  { %2007 = vadd.xlane.f32.xlu1 %v2006_v44 }
0x17b1   :  { %2120 = vrot.lane.b32.xlu1 %v3886_v22, %s3307_s20 }
0x17b2   :  { %2018 = vrot.lane.b32.xlu0 %v3884_v18, %s3309_s22 }
0x17b5   :  { %2116 = vrot.lane.b32.xlu1 %v3892_v17, %s3307_s20 }
0x17b6   :  { %2118 = vrot.lane.b32.xlu0 %v3873_v7, %s3307_s20 }
0x17d5   :  { %1910 = vmax.xlane.f32.xlu0 %v1909_v5 }
0x17d9   :  { %1913 = vmax.xlane.f32.xlu1 %v1912_v27 }
0x1825   :  { %v2005_v0 = vpop.xlane.xlu0 %2004 }
0x1826   :  { %3255 = vrcp.f32 %v2005_v0 }
0x1829   :  { %v2008_v6 = vpop.xlane.xlu1 %2007  ;;  %v2019_v31 = vpop.permute.xlu0 %2018 }
0x182a   :  { %3257 = vrcp.f32 %v2008_v6  ;;  %3041 = vmatpush3.bf16.msra.mxu0 %v2019_v31 }
0x182b   :  { %3042 = vmatprep.subr.bf16.mxu0 %v3299_v2 }
0x182d   :  { %v2121_v11 = vpop.permute.xlu1 %2120  ;;  %v2119_v16 = vpop.permute.xlu0 %2118 }
0x182e   :  { %3043 = vmatpush3.bf16.msra.mxu0 %v2017_v55  ;;  %v2129_v15 = vsel %vm247_vm5, %v2121_v11, 0  ;;  %v2126_v12 = vsel %vm247_vm5, %v2119_v16, 0 }
0x182f   :  { %3056 = vmatprep.subr.bf16.mxu0 %v3299_v2 }
0x1831   :  { %v2117_v23 = vpop.permute.xlu1 %2116 }
0x1833   :  { %v3256_v50 = vpop.eup %3255 }
0x1834   :  { %v2011_v10 = vmul.f32 %v3256_v50, %v3252_v52 }
0x1837   :  { %v3258_v61 = vpop.eup %3257 }
0x1838   :  { %v2012_v13 = vmul.f32 %v3258_v61, %v3254_v56 }
0x183a   :  { %v2013_v14 = vpack.c.bf16 %v2012_v13, %v2011_v10 }
0x183c   :  { %3045 = vmatmul.mubr.msk.bf16.vlgmr.msra.gmra.mxu0 %vm177_vm4, %v2013_v14 }
0x183d   :  { %3057 = vmatpush3.bf16.xpose.msra.mxu0 %v2129_v15  ;;  %3060 = vmatprep.mubr.msk.bf16.mxu0 %vm3300_vm0, %v3299_v2 }
0x183e   :  { %3058 = vmatprep.subr.bf16.mxu0 %v3299_v2 }
0x1845   :  { %3059 = vmatpush3.bf16.xpose.msra.mxu0 %v2126_v12 }
0x1846   :  { %3080 = vmatprep.subr.bf16.mxu0 %v3299_v2 }
0x184c   :  { %3061 = vmatmul.mubr.msk.bf16.vlgmr.msra.gmra.mxu0 %vm247_vm5, %v2117_v23 }
0x184d   :  { %3081 = vmatpush3.bf16.msra.mxu0 %v1858_v38  ;;  %3084 = vmatprep.mubr.msk.bf16.mxu0 %vm3300_vm0, %v3299_v2 }
0x184e   :  { %3082 = vmatprep.subr.bf16.mxu0 %v3299_v2 }
0x1851   :  { %3083 = vmatpush3.bf16.msra.mxu0 %v1856_v8 }
0x1852   :  { %3088 = vmatprep.subr.bf16.mxu0 %v3299_v2 }
0x185e   :  { %v1911_v24 = vpop.xlane.xlu0 %1910 }
0x185f   :  { %v1915_v58 = vsub.f32 %v1903_v3, %v1911_v24 }
0x1861   :  { %v1917_v26 = vmul.f32 1.442695, %v1915_v58 }
0x1862   :  { %v1914_v28 = vpop.xlane.xlu1 %1913 }
0x1863   :  { %3259 = vpow2.f32 %v1917_v26  ;;  %v1916_v8 = vsub.f32 %v1906_v4, %v1914_v28 }
0x1865   :  { %v1919_v35 = vmul.f32 1.442695, %v1916_v8 }
0x1867   :  { %3261 = vpow2.f32 %v1919_v35 }
0x1870   :  { %v3260_v9 = vpop.eup %3259 }
0x1871   :  { %v1921_v62 = vsel %vm177_vm4, %v3260_v9, 0.0 }
0x1872   :  { %1922 = vadd.xlane.f32.xlu1 %v1921_v62 }
0x1874   :  { %v3262_v59 = vpop.eup %3261 }
0x1875   :  { %v1924_v49 = vsel %vm177_vm4, %v3262_v59, 0.0 }
0x1883   :  { %2068 = vrot.lane.b32.xlu1 %v3884_v18, %s3305_s5 }
0x1887   :  { %2197 = vrot.lane.b32.xlu1 %v3884_v18, %s3301_s28  ;;  %v3965_v18 = vld [vmem:[%s4093_s4] sm:$0xff] }
0x18fb   :  { %v1923_v29 = vpop.xlane.xlu1 %1922 }
0x18fc   :  { %v3957_v42 = vpop.f32.mrf.mxu0 }
0x18fe   :  { %v3046_v30 = vpop.f32.mrf.mxu0 }
0x18ff   :  { %v2069_v63 = vpop.permute.xlu1 %2068 }
0x1900   :  { %v3959_v33 = vpop.f32.mrf.mxu0  ;;  %3049 = vmatpush3.bf16.msra.mxu1 %v2069_v63 }
0x1901   :  { %3050 = vmatprep.subr.bf16.mxu1 %v3299_v2 }
0x1902   :  { %v3047_v34 = vpop.f32.mrf.mxu0 }
0x1903   :  { %v2198_v11 = vpop.permute.xlu1 %2197 }
0x190c   :  { %v2165_v37 = vpop.f32.mrf.mxu0 }
0x190d   :  { %v2166_v39 = vadd.f32 %v3965_v18, %v2165_v37 }
0x190e   :  { %v3062_v41 = vpop.f32.mrf.mxu0 }
0x190f   :  { %v2172_v43 = vsel %vm177_vm4, %v2166_v39, -inf }
0x1910   :  { %2173 = vmax.xlane.f32.xlu0 %v2172_v43  ;;  %v2168_v45 = vpop.f32.mrf.mxu0 }
0x1911   :  { %v2169_v46 = vadd.f32 %v3972_v21, %v2168_v45 }
0x1912   :  { %v3063_v36 = vpop.f32.mrf.mxu0 }
0x1913   :  { %v2175_v51 = vsel %vm177_vm4, %v2169_v46, -inf }
0x1914   :  { %2176 = vmax.xlane.f32.xlu0 %v2175_v51 }
0x1918   :  { %1925 = vadd.xlane.f32.xlu0 %v1924_v49 }
0x192e   :  { %2066 = vrot.lane.b32.xlu0 %v3869_v57, %s3305_s5 }
0x1999   :  { %v2174_v54 = vpop.xlane.xlu0 %2173 }
0x199a   :  { %v2178_v52 = vsub.f32 %v2166_v39, %v2174_v54 }
0x199c   :  { %v2180_v60 = vmul.f32 1.442695, %v2178_v52 }
0x199d   :  { %v2177_v56 = vpop.xlane.xlu0 %2176 }
0x199e   :  { %3263 = vpow2.f32 %v2180_v60  ;;  %v2179_v44 = vsub.f32 %v2169_v46, %v2177_v56 }
0x199f   :  { %3265 = vrcp.f32 %v1923_v29 }
0x19a0   :  { %v2182_v3 = vmul.f32 1.442695, %v2179_v44 }
0x19a1   :  { %v1926_v4 = vpop.xlane.xlu0 %1925 }
0x19a2   :  { %3267 = vpow2.f32 %v2182_v3 }
0x19a3   :  { %3269 = vrcp.f32 %v1926_v4 }
0x19a5   :  { %v2067_v5 = vpop.permute.xlu0 %2066 }
0x19a6   :  { %3051 = vmatpush3.bf16.msra.mxu1 %v2067_v5 }
0x19a7   :  { %3064 = vmatprep.subr.bf16.mxu1 %v3299_v2 }
0x19ab   :  { %v3264_v27 = vpop.eup %3263 }
0x19ac   :  { %v2184_v55 = vsel %vm177_vm4, %v3264_v27, 0.0  ;;  %v3266_v0 = vpop.eup %3265 }
0x19ad   :  { %2185 = vadd.xlane.f32.xlu1 %v2184_v55  ;;  %v1929_v61 = vmul.f32 %v3266_v0, %v3260_v9 }
0x19af   :  { %v3268_v6 = vpop.eup %3267 }
0x19b0   :  { %v3270_v31 = vpop.eup %3269  ;;  %v2187_v50 = vsel %vm177_vm4, %v3268_v6, 0.0 }
0x19b1   :  { %2188 = vadd.xlane.f32.xlu0 %v2187_v50  ;;  %v1930_v10 = vmul.f32 %v3270_v31, %v3262_v59 }
0x19b3   :  { %v1931_v13 = vpack.c.bf16 %v1930_v10, %v1929_v61  ;;  %v2375_v61 = vrot.slane %v3792_v40, %v940_v25 }
0x19b5   :  { %3053 = vmatmul.mubr.msk.bf16.vlgmr.msra.gmra.mxu1 %vm177_vm4, %v1931_v13 }
0x19b6   :  { %3065 = vmatpush3.bf16.msra.mxu1 %v2198_v11  ;;  %3068 = vmatprep.mubr.msk.bf16.mxu1 %vm3300_vm0, %v3299_v2 }
0x19b7   :  { %3066 = vmatprep.subr.bf16.mxu1 %v3299_v2 }
0x19be   :  { %2195 = vrot.lane.b32.xlu1 %v3869_v57, %s3301_s28 }
0x19c2   :  { %2249 = vrot.lane.b32.xlu1 %v3873_v7, %s3308_s21 }
0x19c7   :  { %2251 = vrot.lane.b32.xlu0 %v3886_v22, %s3308_s21 }
0x19cb   :  { %2247 = vrot.lane.b32.xlu0 %v3892_v17, %s3308_s21 }
0x1a36   :  { %v2186_v14 = vpop.xlane.xlu1 %2185 }
0x1a37   :  { %3271 = vrcp.f32 %v2186_v14 }
0x1a3a   :  { %v2196_v15 = vpop.permute.xlu1 %2195  ;;  %v2189_v16 = vpop.xlane.xlu0 %2188 }
0x1a3b   :  { %3273 = vrcp.f32 %v2189_v16  ;;  %3067 = vmatpush3.bf16.msra.mxu1 %v2196_v15 }
0x1a3c   :  { %3072 = vmatprep.subr.bf16.mxu1 %v3299_v2 }
0x1a3e   :  { %v2252_v24 = vpop.permute.xlu0 %2251  ;;  %v2250_v22 = vpop.permute.xlu1 %2249 }
0x1a3f   :  { %v2260_v58 = vsel %vm247_vm5, %v2252_v24, 0  ;;  %v2257_v17 = vsel %vm247_vm5, %v2250_v22, 0 }
0x1a42   :  { %v2248_v26 = vpop.permute.xlu0 %2247 }
0x1a44   :  { %v3272_v12 = vpop.eup %3271 }
0x1a45   :  { %v2192_v57 = vmul.f32 %v3272_v12, %v3264_v27 }
0x1a48   :  { %v3274_v38 = vpop.eup %3273 }
0x1a49   :  { %v2193_v23 = vmul.f32 %v3274_v38, %v3268_v6 }
0x1a4b   :  { %v2194_v7 = vpack.c.bf16 %v2193_v23, %v2192_v57 }
0x1a4d   :  { %3069 = vmatmul.mubr.msk.bf16.vlgmr.msra.gmra.mxu1 %vm177_vm4, %v2194_v7 }
0x1a4e   :  { %3073 = vmatpush3.bf16.xpose.msra.mxu1 %v2260_v58  ;;  %3076 = vmatprep.mubr.msk.bf16.mxu1 %vm3300_vm0, %v3299_v2 }
0x1a4f   :  { %3074 = vmatprep.subr.bf16.mxu1 %v3299_v2 }
0x1a56   :  { %3075 = vmatpush3.bf16.xpose.msra.mxu1 %v2257_v17 }
0x1a57   :  { %3096 = vmatprep.subr.bf16.mxu1 %v3299_v2 }
0x1a5d   :  { %3077 = vmatmul.mubr.msk.bf16.vlgmr.msra.gmra.mxu1 %vm247_vm5, %v2248_v26 }
0x1a5e   :  { %3104 = vmatprep.mubr.msk.bf16.mxu1 %vm3300_vm0, %v3299_v2  ;;  %3097 = vmatpush3.bf16.msra.mxu1 %v3165_v19 }
0x1a5f   :  { %3098 = vmatprep.subr.bf16.mxu1 %v3299_v2 }
0x1a75   :  { %v2109_v9 = vpop.f32.mrf.mxu1 }
0x1a76   :  { %v2110_v30 = vadd.f32 %v2109_v9, %v3957_v42 }
0x1a77   :  { %v3054_v62 = vpop.f32.mrf.mxu1 }
0x1a79   :  { %v2112_v28 = vpop.f32.mrf.mxu1 }
0x1a7a   :  { %v2113_v35 = vadd.f32 %v2112_v28, %v3959_v33 }
0x1a7b   :  { %v3055_v29 = vpop.f32.mrf.mxu1 }
0x1b0d   :  { %v2238_v8 = vpop.f32.mrf.mxu1 }
0x1b0e   :  { %v2245_v63 = vadd.f32 %v2238_v8, %v2110_v30  ;;  %v3164_v30 = vld [vmem:[%s4094_s10 + $0x10] sm:$0xff]  }
0x1b0f   :  { %v3070_v34 = vpop.f32.mrf.mxu1 }
0x1b11   :  { %v2241_v37 = vpop.f32.mrf.mxu1 }
0x1b12   :  { %v2246_v39 = vadd.f32 %v2241_v37, %v2113_v35 }
0x1b13   :  { %v3071_v41 = vpop.f32.mrf.mxu1 }
0x1b14   :  { %v4036_v41 = vld [vmem:[%s4087_s6 + $0x10] sm:$0x7] }
0x1b1d   :  { %v2296_v43 = vpop.f32.mrf.mxu1 }
0x1b1e   :  { %v2297_v45 = vadd.f32 %v3965_v18, %v2296_v43  ;;  %v2409_v43 = vrot.slane %v3792_v40, %v1468_v47  ;;  %v3167_v47 = vld [vmem:[%s4095_s11 + $0x28] sm:$0xff]   ;;  %v3168_v40 = vld [vmem:[%s4095_s11 + $0x20] sm:$0xff]  }
0x1b1f   :  { %v3078_v46 = vpop.f32.mrf.mxu1 }
0x1b20   :  { %v2303_v36 = vsel %vm177_vm4, %v2297_v45, -inf  ;;  %v2415_v46 = vrot.slane %v4036_v41, %v3454_v32  ;;  %v3166_v32 = vld [vmem:[%s4095_s11 + $0x30] sm:$0xff]  }
0x1b21   :  { %2304 = vmax.xlane.f32.xlu1 %v2303_v36  ;;  %v2299_v51 = vpop.f32.mrf.mxu1  ;;  %3099 = vmatpush3.bf16.msra.mxu1 %v3166_v32 }
0x1b22   :  { %v2300_v59 = vadd.f32 %v3972_v21, %v2299_v51  ;;  %3100 = vmatprep.subr.bf16.mxu1 %v3299_v2 }
0x1b23   :  { %v3079_v49 = vpop.f32.mrf.mxu1 }
0x1b24   :  { %v2306_v42 = vsel %vm177_vm4, %v2300_v59, -inf }
0x1b25   :  { %2307 = vmax.xlane.f32.xlu0 %v2306_v42  ;;  %3101 = vmatpush3.bf16.msra.mxu1 %v3167_v47 }
0x1b26   :  { %3102 = vmatprep.subr.bf16.mxu1 %v3299_v2 }
0x1b29   :  { %3103 = vmatpush3.bf16.msra.mxu1 %v3168_v40 }
0x1baa   :  { %v2305_v54 = vpop.xlane.xlu1 %2304 }
0x1bab   :  { %v2309_v52 = vsub.f32 %v2297_v45, %v2305_v54 }
0x1bad   :  { %v2311_v33 = vmul.f32 1.442695, %v2309_v52 }
0x1bae   :  { %v2308_v60 = vpop.xlane.xlu0 %2307 }
0x1baf   :  { %3275 = vpow2.f32 %v2311_v33  ;;  %v2310_v56 = vsub.f32 %v2300_v59, %v2308_v60 }
0x1bb1   :  { %v2313_v44 = vmul.f32 1.442695, %v2310_v56 }
0x1bb3   :  { %3277 = vpow2.f32 %v2313_v44 }
0x1bbc   :  { %v3276_v18 = vpop.eup %3275 }
0x1bbd   :  { %v2315_v3 = vsel %vm177_vm4, %v3276_v18, 0.0 }
0x1bbe   :  { %2316 = vadd.xlane.f32.xlu0 %v2315_v3 }
0x1bc0   :  { %v3278_v4 = vpop.eup %3277 }
0x1bc1   :  { %v2318_v5 = vsel %vm177_vm4, %v3278_v4, 0.0 }
0x1bc2   :  { %2319 = vadd.xlane.f32.xlu1 %v2318_v5 }
0x1c47   :  { %v2317_v21 = vpop.xlane.xlu0 %2316 }
0x1c48   :  { %3279 = vrcp.f32 %v2317_v21 }
0x1c4b   :  { %v2320_v27 = vpop.xlane.xlu1 %2319 }
0x1c4c   :  { %3281 = vrcp.f32 %v2320_v27 }
0x1c55   :  { %v3280_v55 = vpop.eup %3279 }
0x1c56   :  { %v2323_v6 = vmul.f32 %v3280_v55, %v3276_v18 }
0x1c59   :  { %v3282_v0 = vpop.eup %3281 }
0x1c5a   :  { %v2324_v31 = vmul.f32 %v3282_v0, %v3278_v4 }
0x1c5c   :  { %v2325_v50 = vpack.c.bf16 %v2324_v31, %v2323_v6 }
0x1c5e   :  { %3085 = vmatmul.mubr.msk.bf16.vlgmr.msra.gmra.mxu0 %vm177_vm4, %v2325_v50 }
0x1c5f   :  { %3092 = vmatprep.mubr.msk.bf16.mxu0 %vm3300_vm0, %v3299_v2 }
0x1d1e   :  { %v2363_v10 = vpop.f32.mrf.mxu0 }
0x1d1f   :  { %v2370_v13 = vadd.f32 %v2363_v10, %v2245_v63 }
0x1d20   :  { %v3086_v11 = vpop.f32.mrf.mxu0 }
0x1d21   :  { %v2376_v14 = vadd.f32 %v2375_v61, %v2370_v13 }
0x1d22   :  { %v2366_v15 = vpop.f32.mrf.mxu0 }
0x1d23   :  { %v2371_v16 = vadd.f32 %v2366_v15, %v2246_v39  ;;  %v2378_v12 = vadd.f32 %v2376_v14, %v3839_v53 }
0x1d24   :  { %v3087_v38 = vpop.f32.mrf.mxu0 }
0x1d25   :  { %v2377_v57 = vadd.f32 %v2375_v61, %v2371_v16  ;;  %v2380_v23 = vsel %vm177_vm4, %v2378_v12, 0.0 }
0x1d26   :  { %2381 = vadd.xlane.f32.xlu0 %v2380_v23 }
0x1d27   :  { %v2379_v24 = vadd.f32 %v2377_v57, %v3841_v1  ;;  %v3163_v1 = vld [vmem:[%s4094_s10 + $0x18] sm:$0xff]  }
0x1d28   :  { %3089 = vmatpush3.bf16.msra.mxu0 %v3163_v1 }
0x1d29   :  { %v2383_v7 = vsel %vm177_vm4, %v2379_v24, 0.0  ;;  %3090 = vmatprep.subr.bf16.mxu0 %v3299_v2 }
0x1d2a   :  { %2384 = vadd.xlane.f32.xlu1 %v2383_v7 }
0x1d2c   :  { %3091 = vmatpush3.bf16.msra.mxu0 %v3164_v30 }
0x1d2d   :  { %3108 = vmatprep.subr.bf16.mxu0 %v3299_v2 }
0x1daf   :  { %v2382_v58 = vpop.xlane.xlu0 %2381 }
0x1db0   :  { %v2386_v25 = vmul.f32 0.03125, %v2382_v58 }
0x1db2   :  { %v2388_v22 = vsub.f32 %v2378_v12, %v2386_v25 }
0x1db3   :  { %v2385_v17 = vpop.xlane.xlu1 %2384 }
0x1db4   :  { %v2387_v26 = vmul.f32 0.03125, %v2385_v17  ;;  %v2390_v9 = vmul.f32 %v2388_v22, %v2388_v22 }
0x1db6   :  { %v2389_v62 = vsub.f32 %v2379_v24, %v2387_v26  ;;  %v2392_v28 = vsel %vm177_vm4, %v2390_v9, 0.0 }
0x1db7   :  { %2393 = vadd.xlane.f32.xlu0 %v2392_v28  ;;  %v3170_v28 = vld [vmem:[%s4096_s12] sm:$0xff]  }
0x1db8   :  { %v2391_v53 = vmul.f32 %v2389_v62, %v2389_v62 }
0x1dba   :  { %v2395_v29 = vsel %vm177_vm4, %v2391_v53, 0.0 }
0x1dbb   :  { %2396 = vadd.xlane.f32.xlu1 %v2395_v29 }
0x1e40   :  { %v2394_v8 = vpop.xlane.xlu0 %2393 }
0x1e41   :  { %v2398_v63 = vmul.f32 0.03125, %v2394_v8 }
0x1e43   :  { %v2400_v34 = vadd.f32 1e-06, %v2398_v63 }
0x1e44   :  { %v2397_v35 = vpop.xlane.xlu1 %2396 }
0x1e45   :  { %3283 = vrsqrt.f32 %v2400_v34  ;;  %v2399_v37 = vmul.f32 0.03125, %v2397_v35  ;;  %v2599_v34 = vrot.slane %v4036_v41, %v3428_v20 }
0x1e47   :  { %v2401_v39 = vadd.f32 1e-06, %v2399_v37  ;;  %v2605_v37 = vrot.slane %v4036_v41, %v3548_v48 }
0x1e49   :  { %3285 = vrsqrt.f32 %v2401_v39 }
0x1e52   :  { %v3284_v45 = vpop.eup %3283 }
0x1e53   :  { %v2404_v36 = vmul.f32 %v3284_v45, %v2388_v22 }
0x1e55   :  { %v2410_v51 = vmul.f32 %v2409_v43, %v2404_v36 }
0x1e56   :  { %v3286_v59 = vpop.eup %3285 }
0x1e57   :  { %v2405_v49 = vmul.f32 %v3286_v59, %v2389_v62  ;;  %v2416_v42 = vadd.f32 %v2415_v46, %v2410_v51  ;;  %v3169_v62 = vld [vmem:[%s4096_s12 + $0x8] sm:$0xff]  }
0x1e59   :  { %v2411_v54 = vmul.f32 %v2409_v43, %v2405_v49 }
0x1e5b   :  { %v2417_v52 = vadd.f32 %v2415_v46, %v2411_v54 }
0x1e5d   :  { %v2418_v33 = vpack.c.bf16 %v2417_v52, %v2416_v42 }
0x1e5f   :  { %3093 = vmatmul.mubr.msk.bf16.vlgmr.msra.gmra.mxu0 %vm177_vm4, %v2418_v33 }
0x1e60   :  { %3112 = vmatprep.mubr.msk.bf16.mxu0 %vm3300_vm0, %v3299_v2  ;;  %3109 = vmatpush3.bf16.msra.mxu0 %v3169_v62 }
0x1e61   :  { %3110 = vmatprep.subr.bf16.mxu0 %v3299_v2 }
0x1e64   :  { %3111 = vmatpush3.bf16.msra.mxu0 %v3170_v28 }
0x1f1f   :  { %v2473_v60 = vpop.f32.mrf.mxu0 }
0x1f20   :  { %v2482_v56 = vmul.f32 0.70710677, %v2473_v60  ;;  %v2480_v55 = vmul.f32 0.5, %v2473_v60 }
0x1f21   :  { %v3094_v44 = vpop.f32.mrf.mxu0 }
0x1f22   :  { %3287 = verf.f32 %v2482_v56 }
0x1f23   :  { %v2476_v18 = vpop.f32.mrf.mxu0 }
0x1f24   :  { %v2483_v3 = vmul.f32 0.70710677, %v2476_v18  ;;  %v2481_v0 = vmul.f32 0.5, %v2476_v18 }
0x1f25   :  { %v3095_v4 = vpop.f32.mrf.mxu0 }
0x1f26   :  { %3289 = verf.f32 %v2483_v3 }
0x1f2f   :  { %v3288_v5 = vpop.eup %3287 }
0x1f30   :  { %v2486_v21 = vadd.f32 1.0, %v3288_v5 }
0x1f32   :  { %v2488_v31 = vmul.f32 %v2486_v21, %v2480_v55 }
0x1f33   :  { %v3290_v27 = vpop.eup %3289 }
0x1f34   :  { %v2487_v6 = vadd.f32 1.0, %v3290_v27 }
0x1f36   :  { %v2489_v50 = vmul.f32 %v2487_v6, %v2481_v0 }
0x1f38   :  { %v2490_v61 = vpack.c.bf16 %v2489_v50, %v2488_v31 }
0x1f3a   :  { %3105 = vmatmul.mubr.msk.bf16.vlgmr.msra.gmra.mxu1 %vm99_vm3, %v2490_v61 }
0x1ffa   :  { %v2561_v10 = vpop.f32.mrf.mxu1 }
0x1ffb   :  { %v2568_v13 = vadd.f32 %v2561_v10, %v2416_v42 }
0x1ffc   :  { %v3106_v11 = vpop.f32.mrf.mxu1 }
0x1ffd   :  { %v2570_v14 = vsel %vm177_vm4, %v2568_v13, 0.0 }
0x1ffe   :  { %2571 = vadd.xlane.f32.xlu0 %v2570_v14  ;;  %v2564_v15 = vpop.f32.mrf.mxu1 }
0x1fff   :  { %v2569_v16 = vadd.f32 %v2564_v15, %v2417_v52 }
0x2000   :  { %v3107_v12 = vpop.f32.mrf.mxu1 }
0x2001   :  { %v2573_v38 = vsel %vm177_vm4, %v2569_v16, 0.0 }
0x2002   :  { %2574 = vadd.xlane.f32.xlu1 %v2573_v38 }
0x2087   :  { %v2572_v57 = vpop.xlane.xlu0 %2571 }
0x2088   :  { %v2576_v23 = vmul.f32 0.03125, %v2572_v57 }
0x208a   :  { %v2578_v24 = vsub.f32 %v2568_v13, %v2576_v23 }
0x208b   :  { %v2575_v7 = vpop.xlane.xlu1 %2574 }
0x208c   :  { %v2577_v58 = vmul.f32 0.03125, %v2575_v7  ;;  %v2580_v25 = vmul.f32 %v2578_v24, %v2578_v24 }
0x208e   :  { %v2579_v22 = vsub.f32 %v2569_v16, %v2577_v58  ;;  %v2582_v17 = vsel %vm177_vm4, %v2580_v25, 0.0 }
0x208f   :  { %2583 = vadd.xlane.f32.xlu0 %v2582_v17 }
0x2090   :  { %v2581_v26 = vmul.f32 %v2579_v22, %v2579_v22 }
0x2092   :  { %v2585_v9 = vsel %vm177_vm4, %v2581_v26, 0.0 }
0x2093   :  { %2586 = vadd.xlane.f32.xlu1 %v2585_v9 }
0x2118   :  { %v2584_v53 = vpop.xlane.xlu0 %2583 }
0x2119   :  { %v2588_v29 = vmul.f32 0.03125, %v2584_v53 }
0x211b   :  { %v2590_v1 = vadd.f32 1e-06, %v2588_v29 }
0x211c   :  { %v2587_v30 = vpop.xlane.xlu1 %2586 }
0x211d   :  { %3291 = vrsqrt.f32 %v2590_v1  ;;  %v2589_v8 = vmul.f32 0.03125, %v2587_v30 }
0x211f   :  { %v2591_v63 = vadd.f32 1e-06, %v2589_v8 }
0x2121   :  { %3293 = vrsqrt.f32 %v2591_v63 }
0x212a   :  { %v3292_v35 = vpop.eup %3291 }
0x212b   :  { %v2594_v39 = vmul.f32 %v3292_v35, %v2578_v24 }
0x212d   :  { %v2600_v43 = vmul.f32 %v2599_v34, %v2594_v39 }
0x212e   :  { %v3294_v45 = vpop.eup %3293 }
0x212f   :  { %v2595_v2 = vmul.f32 %v3294_v45, %v2579_v22  ;;  %v2606_v46 = vadd.f32 %v2605_v37, %v2600_v43 }
0x2131   :  { %v2601_v36 = vmul.f32 %v2599_v34, %v2595_v2 }
0x2133   :  { %v2607_v51 = vadd.f32 %v2605_v37, %v2601_v36 }
0x2135   :  { %v2608_v59 = vpack.c.bf16 %v2607_v51, %v2606_v46 }
0x2137   :  { %3113 = vmatmul.mubr.msk.bf16.vlgmr.msra.gmra.mxu0 %vm177_vm4, %v2608_v59 }
0x21f7   :  { %v2662_v49 = vpop.f32.mrf.mxu0 }
0x21f8   :  { %2669 = vst [vmem:[%s4097_s13] sm:$0xff] %v2662_v49 }
0x21f9   :  { %v3114_v20 = vpop.f32.mrf.mxu0 }
0x21fb   :  { %v2665_v42 = vpop.f32.mrf.mxu0 }
0x21fc   :  { %2670 = vst [vmem:[%s4097_s13 + $0x8] sm:$0xff] %v2665_v42 }
0x21fd   :  { %v3115_v48 = vpop.f32.mrf.mxu0 }

</bundles_post_ra>
